<compile_context>
chip_gen: v5e
topology: v5e:2x2
jax: 0.10.0
libtpu: 0.0.40
codegen_flags: <defaults>
</compile_context>

<pallas_src>
import jax
import jax.numpy as jnp
from jax import lax
from jax.experimental import pallas as pl
from jax.experimental.pallas import tpu as pltpu

NUM_LAYERS = 2  # fixed in this synthetic instantiation


def encoder_kernel(x_ref, xatt_ref, whp_ref, wih0_ref, whh0_ref, b0_ref,
                   wih1_ref, whh1_ref, b1_ref, out_ref, hT_ref, cT_ref):
    T, B, I = x_ref.shape
    H = hT_ref.shape[2]
    f32 = jnp.float32
    bf16 = jnp.bfloat16

    whp = whp_ref[...]                                   # (H, I)   bf16
    wih0 = wih0_ref[...]                                 # (I, 4H)  bf16
    whh0 = whh0_ref[...]                                 # (H, 4H)  bf16
    wih1 = wih1_ref[...]                                 # (H, 4H)  bf16
    whh1 = whh1_ref[...]                                 # (H, 4H)  bf16
    # Hoist bias broadcasts out of the recurrence (no CSE of broadcast_in_dim).
    b0 = jnp.broadcast_to(b0_ref[...], (B, 4 * H))       # f32
    b1 = jnp.broadcast_to(b1_ref[...], (B, 4 * H))       # f32

    def lstm_cell(inp, h_prev, c_prev, wih, whh, b):
        # Two independent bf16 MXU pushes (f32 accumulate); operands stay
        # register-resident — no VMEM scratch assembly on the critical path.
        gates = (jnp.dot(inp.astype(bf16), wih, preferred_element_type=f32)
                 + jnp.dot(h_prev.astype(bf16), whh, preferred_element_type=f32)
                 + b)
        s = jax.nn.sigmoid(gates)                 # single full-(B,4H) activation
        i_g = s[:, 0:H]
        f_g = s[:, H:2 * H]
        g_g = 2.0 * s[:, 2 * H:3 * H] - 1.0       # == tanh of unscaled g gate
        o_g = s[:, 3 * H:4 * H]
        c_new = f_g * c_prev + i_g * g_g
        h_new = o_g * jnp.tanh(c_new)
        return h_new, c_new

    def stacked_lstm(layer0_in, h0, c0, h1, c1):
        h0n, c0n = lstm_cell(layer0_in, h0, c0, wih0, whh0, b0)
        h1n, c1n = lstm_cell(h0n, h1, c1, wih1, whh1, b1)
        return h0n, c0n, h1n, c1n

    # ---- t == 0: initial state is None -> zero h/c, attention gate == 1 ----
    zeros_bh = jnp.zeros((B, H), f32)
    h0, c0, h1, c1 = stacked_lstm(x_ref[0], zeros_bh, zeros_bh, zeros_bh, zeros_bh)
    out_ref[0] = h1

    scale = jnp.float32(I)   # softmax * input_size

    # ---- t = 1 .. T-1: attention-gated steps ----
    def step(t, carry):
        h0, c0, h1, c1 = carry
        xt = x_ref[t]                                            # (B, I) f32
        # x-half of the attention (x@Wxp + battc) was precomputed once outside
        # the recurrence; only the h-dependent (B,H)@(H,I) dot stays per step.
        logits = xatt_ref[t] + jnp.dot(h1.astype(bf16), whp,
                                       preferred_element_type=f32)
        m = jnp.max(logits, axis=1, keepdims=True)
        e = jnp.exp(logits - m)
        denom = jnp.sum(e, axis=1, keepdims=True)
        att = e * (pl.reciprocal(denom, approx=True) * scale)    # EUP; no Newton
        h0n, c0n, h1n, c1n = stacked_lstm(xt * att, h0, c0, h1, c1)
        out_ref[t] = h1n
        return (h0n, c0n, h1n, c1n)

    # Full unroll only while T is small; otherwise partial unroll to keep code
    # size / vreg live ranges bounded (recurrence is serial either way).
    unroll = True if T <= 32 else 8
    h0, c0, h1, c1 = lax.fori_loop(1, T, step, (h0, c0, h1, c1), unroll=unroll)

    hT_ref[0] = h0
    hT_ref[1] = h1
    cT_ref[0] = c0
    cT_ref[1] = c1


def fold_params(params):
    """Host-side algebraic folding + bf16 weight cast (done once)."""
    H = params["whh0_t"].shape[0]
    bf16 = jnp.bfloat16
    # attention: (x@Wx + bx + h@Wh + bh) @ Watt + batt
    #          = x @ (Wx@Watt)  +  h @ (Wh@Watt)  +  ((bx+bh)@Watt + batt)
    # Wxp is kept separate (applied once, outside the recurrence); Whp is the
    # per-step h-term weight.
    wxp = params["wx_t"] @ params["watt_t"]                             # (I, I) f32
    whp = (params["wh_t"] @ params["watt_t"]).astype(bf16)              # (H, I)
    battc = (params["bx"] + params["bh"]) @ params["watt_t"] + params["batt"]
    # LSTM: pre-scale the g-gate block by 2 so a single sigmoid over all 4H
    # gate columns suffices (tanh(z) = 2*sigmoid(2z) - 1).  Weights -> bf16.
    gate_scale = jnp.concatenate([jnp.ones((2 * H,), jnp.float32),
                                  2.0 * jnp.ones((H,), jnp.float32),
                                  jnp.ones((H,), jnp.float32)])
    return {
        "wxp": wxp, "whp": whp, "battc": battc,
        "wih0": (params["wih0_t"] * gate_scale).astype(bf16),
        "whh0": (params["whh0_t"] * gate_scale).astype(bf16),
        "b0": params["b0"] * gate_scale,
        "wih1": (params["wih1_t"] * gate_scale).astype(bf16),
        "whh1": (params["whh1_t"] * gate_scale).astype(bf16),
        "b1": params["b1"] * gate_scale,
    }


def encoder_forward(inputs_bti, folded):
    """inputs_bti: (B, T, I) batch-first, like the PyTorch caller (state=None)."""
    x = jnp.transpose(inputs_bti, (1, 0, 2)).astype(jnp.float32)        # (T, B, I)
    T, B, I = x.shape
    H = folded["whh0"].shape[0]
    L = NUM_LAYERS

    # Hoisted x-dependent attention half: one batched, well-shaped matmul off
    # the serial recurrence (its T per-step cost is removed from the kernel).
    xatt = (jnp.einsum("tbi,ij->tbj", x, folded["wxp"])
            + folded["battc"]).astype(jnp.float32)                      # (T, B, I)

    weights = (folded["whp"], folded["wih0"], folded["whh0"], folded["b0"],
               folded["wih1"], folded["whh1"], folded["b1"])

    def full_spec(a):
        return pl.BlockSpec(a.shape, lambda i, _nd=a.ndim: (0,) * _nd)

    grid_spec = pltpu.PrefetchScalarGridSpec(
        num_scalar_prefetch=0,
        grid=(1,),                        # single invocation; recurrence is in-kernel
        in_specs=[pl.BlockSpec((T, B, I), lambda i: (0, 0, 0)),   # x
                  pl.BlockSpec((T, B, I), lambda i: (0, 0, 0))]   # xatt
                 + [full_spec(w) for w in weights],
        out_specs=[pl.BlockSpec((T, B, H), lambda i: (0, 0, 0)),
                   pl.BlockSpec((L, B, H), lambda i: (0, 0, 0)),
                   pl.BlockSpec((L, B, H), lambda i: (0, 0, 0))],
    )

    out, h, c = pl.pallas_call(
        encoder_kernel,
        grid_spec=grid_spec,
        out_shape=(jax.ShapeDtypeStruct((T, B, H), jnp.float32),
                   jax.ShapeDtypeStruct((L, B, H), jnp.float32),
                   jax.ShapeDtypeStruct((L, B, H), jnp.float32)),
        compiler_params=pltpu.CompilerParams(
            dimension_semantics=("arbitrary",)),
    )(x, xatt, *weights)
    return out, (h, c)


def encoder_reference(inputs_bti, params):
    """Pure-JAX mirror of the PyTorch forward (state=None initial), unfolded params."""
    x = jnp.transpose(inputs_bti, (1, 0, 2)).astype(jnp.float32)
    T, B, I = x.shape
    H = params["whh0_t"].shape[0]
    L = NUM_LAYERS
    h = jnp.zeros((L, B, H), jnp.float32)
    c = jnp.zeros((L, B, H), jnp.float32)
    outs = []
    for t in range(T):
        xt = x[t]
        if t == 0:
            att = jnp.ones((B, I), jnp.float32)
        else:
            x_lin = xt @ params["wx_t"] + params["bx"]
            h_lin = h[-1] @ params["wh_t"] + params["bh"]
            logits = (x_lin + h_lin) @ params["watt_t"] + params["batt"]
            att = jax.nn.softmax(logits, axis=1) * I
        layer_in = xt * att
        new_h, new_c = [], []
        for l in range(L):
            wih = params["wih0_t"] if l == 0 else params["wih1_t"]
            whh = params["whh0_t"] if l == 0 else params["whh1_t"]
            b = params["b0"] if l == 0 else params["b1"]
            gates = layer_in @ wih + h[l] @ whh + b
            i_g = jax.nn.sigmoid(gates[:, 0:H])
            f_g = jax.nn.sigmoid(gates[:, H:2 * H])
            g_g = jnp.tanh(gates[:, 2 * H:3 * H])
            o_g = jax.nn.sigmoid(gates[:, 3 * H:4 * H])
            cl = f_g * c[l] + i_g * g_g
            hl = o_g * jnp.tanh(cl)
            new_h.append(hl)
            new_c.append(cl)
            layer_in = hl
        h, c = jnp.stack(new_h), jnp.stack(new_c)
        outs.append(layer_in)
    return jnp.stack(outs), (h, c)


def init_params(key, input_size, num_hiddens):
    I, H = input_size, num_hiddens
    ks = jax.random.split(key, 12)
    s = 0.1

    def rnd(k, shape):
        return jax.random.normal(k, shape, jnp.float32) * s

    return {
        # attention linears (stored transposed: act @ W_T + b)
        "wx_t":  rnd(ks[0], (I, I)),  "bx":  rnd(ks[1], (1, I)),
        "wh_t":  rnd(ks[2], (H, I)),  "bh":  rnd(ks[3], (1, I)),
        "watt_t": rnd(ks[4], (I, I)), "batt": rnd(ks[5], (1, I)),
        # LSTM layer 0 (input I -> hidden H), gates stacked [i|f|g|o]
        "wih0_t": rnd(ks[6], (I, 4 * H)),
        "whh0_t": rnd(ks[7], (H, 4 * H)),
        "b0":     rnd(ks[8], (1, 4 * H)),   # b_ih + b_hh pre-summed
        # LSTM layer 1 (hidden H -> hidden H)
        "wih1_t": rnd(ks[9], (H, 4 * H)),
        "whh1_t": rnd(ks[10], (H, 4 * H)),
        "b1":     rnd(ks[11], (1, 4 * H)),
    }


if __name__ == "__main__":
    B, T, I, H = 4, 8, 16, 32   # batch, seq, input_size, num_hiddens
    key = jax.random.PRNGKey(0)
    k_in, k_par = jax.random.split(key)
    inputs = jax.random.normal(k_in, (B, T, I), jnp.float32)
    params = init_params(k_par, I, H)
    folded = fold_params(params)            # one-time host-side weight folding

    fwd = jax.jit(encoder_forward)
    out, (h, c) = fwd(inputs, folded)
    jax.block_until_ready((out, h, c))

    ref_out, (ref_h, ref_c) = encoder_reference(inputs, params)
    assert out.shape == (T, B, H) and h.shape == (NUM_LAYERS, B, H)
    # bf16 MXU operands (per perf review) perturb at the ~1e-2-relative level
    # over the T-step recurrence; keep a tolerance that still catches real bugs
    # (which show up at O(0.1)).
    assert jnp.allclose(out, ref_out, atol=2e-2, rtol=2e-2)
    assert jnp.allclose(h, ref_h, atol=2e-2, rtol=2e-2)
    assert jnp.allclose(c, ref_c, atol=2e-2, rtol=2e-2)
    print("KERNEL_OK")
</pallas_src>

<mosaic_0001>
module attributes {stable_mosaic.version = 11 : i64} {
  func.func @encoder_kernel(%arg0: i32, %arg1: memref<8x4x16xf32, #tpu.memory_space<vmem>>, %arg2: memref<8x4x16xf32, #tpu.memory_space<vmem>>, %arg3: memref<32x16xbf16, #tpu.memory_space<vmem>>, %arg4: memref<16x128xbf16, #tpu.memory_space<vmem>>, %arg5: memref<32x128xbf16, #tpu.memory_space<vmem>>, %arg6: memref<1x128xf32, #tpu.memory_space<vmem>>, %arg7: memref<32x128xbf16, #tpu.memory_space<vmem>>, %arg8: memref<32x128xbf16, #tpu.memory_space<vmem>>, %arg9: memref<1x128xf32, #tpu.memory_space<vmem>>, %arg10: memref<8x4x32xf32, #tpu.memory_space<vmem>>, %arg11: memref<2x4x32xf32, #tpu.memory_space<vmem>>, %arg12: memref<2x4x32xf32, #tpu.memory_space<vmem>>) attributes {dimension_semantics = [#tpu.dimension_semantics<arbitrary>], iteration_bounds = array<i64: 1>, scalar_prefetch = 0 : i64, scratch_operands = 0 : i64, tpu.core_type = #tpu.core_type<tc>, window_params = [{pipeline_mode = #tpu.pipeline_mode<synchronous>, transform_indices = @transform_0, window_bounds = array<i64: 8, 4, 16>}, {pipeline_mode = #tpu.pipeline_mode<synchronous>, transform_indices = @transform_1, window_bounds = array<i64: 8, 4, 16>}, {pipeline_mode = #tpu.pipeline_mode<synchronous>, transform_indices = @transform_2, window_bounds = array<i64: 32, 16>}, {pipeline_mode = #tpu.pipeline_mode<synchronous>, transform_indices = @transform_3, window_bounds = array<i64: 16, 128>}, {pipeline_mode = #tpu.pipeline_mode<synchronous>, transform_indices = @transform_4, window_bounds = array<i64: 32, 128>}, {pipeline_mode = #tpu.pipeline_mode<synchronous>, transform_indices = @transform_5, window_bounds = array<i64: 1, 128>}, {pipeline_mode = #tpu.pipeline_mode<synchronous>, transform_indices = @transform_6, window_bounds = array<i64: 32, 128>}, {pipeline_mode = #tpu.pipeline_mode<synchronous>, transform_indices = @transform_7, window_bounds = array<i64: 32, 128>}, {pipeline_mode = #tpu.pipeline_mode<synchronous>, transform_indices = @transform_8, window_bounds = array<i64: 1, 128>}, {pipeline_mode = #tpu.pipeline_mode<synchronous>, transform_indices = @transform_9, window_bounds = array<i64: 8, 4, 32>}, {pipeline_mode = #tpu.pipeline_mode<synchronous>, transform_indices = @transform_10, window_bounds = array<i64: 2, 4, 32>}, {pipeline_mode = #tpu.pipeline_mode<synchronous>, transform_indices = @transform_11, window_bounds = array<i64: 2, 4, 32>}]} {
    %c0 = arith.constant 0 : index
    %c0_0 = arith.constant 0 : index
    %0 = vector.load %arg3[%c0, %c0_0] : memref<32x16xbf16, #tpu.memory_space<vmem>>, vector<32x16xbf16>
    %c0_1 = arith.constant 0 : index
    %c0_2 = arith.constant 0 : index
    %1 = vector.load %arg4[%c0_1, %c0_2] : memref<16x128xbf16, #tpu.memory_space<vmem>>, vector<16x128xbf16>
    %c0_3 = arith.constant 0 : index
    %c0_4 = arith.constant 0 : index
    %2 = vector.load %arg5[%c0_3, %c0_4] : memref<32x128xbf16, #tpu.memory_space<vmem>>, vector<32x128xbf16>
    %c0_5 = arith.constant 0 : index
    %c0_6 = arith.constant 0 : index
    %3 = vector.load %arg7[%c0_5, %c0_6] : memref<32x128xbf16, #tpu.memory_space<vmem>>, vector<32x128xbf16>
    %c0_7 = arith.constant 0 : index
    %c0_8 = arith.constant 0 : index
    %4 = vector.load %arg8[%c0_7, %c0_8] : memref<32x128xbf16, #tpu.memory_space<vmem>>, vector<32x128xbf16>
    %c0_9 = arith.constant 0 : index
    %c0_10 = arith.constant 0 : index
    %5 = vector.load %arg6[%c0_9, %c0_10] : memref<1x128xf32, #tpu.memory_space<vmem>>, vector<1x128xf32>
    %6 = vector.shape_cast %5 : vector<1x128xf32> to vector<1x128xf32>
    %7 = vector.broadcast %6 : vector<1x128xf32> to vector<4x128xf32>
    %c0_11 = arith.constant 0 : index
    %c0_12 = arith.constant 0 : index
    %8 = vector.load %arg9[%c0_11, %c0_12] : memref<1x128xf32, #tpu.memory_space<vmem>>, vector<1x128xf32>
    %9 = vector.shape_cast %8 : vector<1x128xf32> to vector<1x128xf32>
    %10 = vector.broadcast %9 : vector<1x128xf32> to vector<4x128xf32>
    %cst = arith.constant 0.000000e+00 : f32
    %11 = vector.broadcast %cst : f32 to vector<4x32xf32>
    %c0_13 = arith.constant 0 : index
    %c0_14 = arith.constant 0 : index
    %c0_15 = arith.constant 0 : index
    %12 = vector.load %arg1[%c0_13, %c0_14, %c0_15] : memref<8x4x16xf32, #tpu.memory_space<vmem>>, vector<1x4x16xf32>
    %13 = vector.shape_cast %12 : vector<1x4x16xf32> to vector<4x16xf32>
    %14 = arith.truncf %13 : vector<4x16xf32> to vector<4x16xbf16>
    %cst_16 = arith.constant dense<0.000000e+00> : vector<4x128xf32>
    %15 = tpu.matmul %14, %1, %cst_16 {dimension_numbers = #tpu.dot_dimension_numbers<[1], [0], [0], [1], [0, 0, 1, 1], [], []>} : vector<4x16xbf16>, vector<16x128xbf16>, vector<4x128xf32> -> vector<4x128xf32>
    %16 = arith.truncf %11 : vector<4x32xf32> to vector<4x32xbf16>
    %cst_17 = arith.constant dense<0.000000e+00> : vector<4x128xf32>
    %17 = tpu.matmul %16, %2, %cst_17 {dimension_numbers = #tpu.dot_dimension_numbers<[1], [0], [0], [1], [0, 0, 1, 1], [], []>} : vector<4x32xbf16>, vector<32x128xbf16>, vector<4x128xf32> -> vector<4x128xf32>
    %18 = arith.addf %15, %17 : vector<4x128xf32>
    %19 = arith.addf %18, %7 : vector<4x128xf32>
    %20 = arith.negf %19 : vector<4x128xf32>
    %21 = math.exp %20 : vector<4x128xf32>
    %cst_18 = arith.constant 1.000000e+00 : f32
    %22 = vector.broadcast %cst_18 : f32 to vector<4x128xf32>
    %23 = arith.addf %22, %21 : vector<4x128xf32>
    %24 = arith.divf %22, %23 : vector<4x128xf32>
    %25 = vector.extract_strided_slice %24 {offsets = [0, 0], sizes = [4, 32], strides = [1, 1]} : vector<4x128xf32> to vector<4x32xf32>
    %26 = vector.extract_strided_slice %24 {offsets = [0, 32], sizes = [4, 32], strides = [1, 1]} : vector<4x128xf32> to vector<4x32xf32>
    %27 = vector.extract_strided_slice %24 {offsets = [0, 64], sizes = [4, 32], strides = [1, 1]} : vector<4x128xf32> to vector<4x32xf32>
    %cst_19 = arith.constant 2.000000e+00 : f32
    %28 = vector.broadcast %cst_19 : f32 to vector<4x32xf32>
    %29 = arith.mulf %28, %27 : vector<4x32xf32>
    %cst_20 = arith.constant 1.000000e+00 : f32
    %30 = vector.broadcast %cst_20 : f32 to vector<4x32xf32>
    %31 = arith.subf %29, %30 : vector<4x32xf32>
    %32 = vector.extract_strided_slice %24 {offsets = [0, 96], sizes = [4, 32], strides = [1, 1]} : vector<4x128xf32> to vector<4x32xf32>
    %33 = arith.mulf %26, %11 : vector<4x32xf32>
    %34 = arith.mulf %25, %31 : vector<4x32xf32>
    %35 = arith.addf %33, %34 : vector<4x32xf32>
    %36 = math.tanh %35 : vector<4x32xf32>
    %37 = arith.mulf %32, %36 : vector<4x32xf32>
    %38 = arith.truncf %37 : vector<4x32xf32> to vector<4x32xbf16>
    %cst_21 = arith.constant dense<0.000000e+00> : vector<4x128xf32>
    %39 = tpu.matmul %38, %3, %cst_21 {dimension_numbers = #tpu.dot_dimension_numbers<[1], [0], [0], [1], [0, 0, 1, 1], [], []>} : vector<4x32xbf16>, vector<32x128xbf16>, vector<4x128xf32> -> vector<4x128xf32>
    %40 = arith.truncf %11 : vector<4x32xf32> to vector<4x32xbf16>
    %cst_22 = arith.constant dense<0.000000e+00> : vector<4x128xf32>
    %41 = tpu.matmul %40, %4, %cst_22 {dimension_numbers = #tpu.dot_dimension_numbers<[1], [0], [0], [1], [0, 0, 1, 1], [], []>} : vector<4x32xbf16>, vector<32x128xbf16>, vector<4x128xf32> -> vector<4x128xf32>
    %42 = arith.addf %39, %41 : vector<4x128xf32>
    %43 = arith.addf %42, %10 : vector<4x128xf32>
    %44 = arith.negf %43 : vector<4x128xf32>
    %45 = math.exp %44 : vector<4x128xf32>
    %cst_23 = arith.constant 1.000000e+00 : f32
    %46 = vector.broadcast %cst_23 : f32 to vector<4x128xf32>
    %47 = arith.addf %46, %45 : vector<4x128xf32>
    %48 = arith.divf %46, %47 : vector<4x128xf32>
    %49 = vector.extract_strided_slice %48 {offsets = [0, 0], sizes = [4, 32], strides = [1, 1]} : vector<4x128xf32> to vector<4x32xf32>
    %50 = vector.extract_strided_slice %48 {offsets = [0, 32], sizes = [4, 32], strides = [1, 1]} : vector<4x128xf32> to vector<4x32xf32>
    %51 = vector.extract_strided_slice %48 {offsets = [0, 64], sizes = [4, 32], strides = [1, 1]} : vector<4x128xf32> to vector<4x32xf32>
    %cst_24 = arith.constant 2.000000e+00 : f32
    %52 = vector.broadcast %cst_24 : f32 to vector<4x32xf32>
    %53 = arith.mulf %52, %51 : vector<4x32xf32>
    %cst_25 = arith.constant 1.000000e+00 : f32
    %54 = vector.broadcast %cst_25 : f32 to vector<4x32xf32>
    %55 = arith.subf %53, %54 : vector<4x32xf32>
    %56 = vector.extract_strided_slice %48 {offsets = [0, 96], sizes = [4, 32], strides = [1, 1]} : vector<4x128xf32> to vector<4x32xf32>
    %57 = arith.mulf %50, %11 : vector<4x32xf32>
    %58 = arith.mulf %49, %55 : vector<4x32xf32>
    %59 = arith.addf %57, %58 : vector<4x32xf32>
    %60 = math.tanh %59 : vector<4x32xf32>
    %61 = arith.mulf %56, %60 : vector<4x32xf32>
    %c0_26 = arith.constant 0 : index
    %c0_27 = arith.constant 0 : index
    %c0_28 = arith.constant 0 : index
    %62 = vector.load %arg10[%c0_26, %c0_27, %c0_28] : memref<8x4x32xf32, #tpu.memory_space<vmem>>, vector<1x4x32xf32>
    %63 = vector.shape_cast %62 : vector<1x4x32xf32> to vector<4x32xf32>
    %64 = vector.shape_cast %61 : vector<4x32xf32> to vector<1x4x32xf32>
    tpu.vector_store %arg10[%c0_26, %c0_27, %c0_28], %64 {strides = array<i32>} : memref<8x4x32xf32, #tpu.memory_space<vmem>>, vector<1x4x32xf32>,
    %cst_29 = arith.constant 1.600000e+01 : f32
    %c1_i32 = arith.constant 1 : i32
    %65 = arith.index_cast %c1_i32 : i32 to index
    %c0_30 = arith.constant 0 : index
    %c0_31 = arith.constant 0 : index
    %66 = vector.load %arg1[%65, %c0_30, %c0_31] : memref<8x4x16xf32, #tpu.memory_space<vmem>>, vector<1x4x16xf32>
    %67 = vector.shape_cast %66 : vector<1x4x16xf32> to vector<4x16xf32>
    %68 = arith.index_cast %c1_i32 : i32 to index
    %c0_32 = arith.constant 0 : index
    %c0_33 = arith.constant 0 : index
    %69 = vector.load %arg2[%68, %c0_32, %c0_33] : memref<8x4x16xf32, #tpu.memory_space<vmem>>, vector<1x4x16xf32>
    %70 = vector.shape_cast %69 : vector<1x4x16xf32> to vector<4x16xf32>
    %71 = arith.truncf %61 : vector<4x32xf32> to vector<4x32xbf16>
    %cst_34 = arith.constant dense<0.000000e+00> : vector<4x16xf32>
    %72 = tpu.matmul %71, %0, %cst_34 {dimension_numbers = #tpu.dot_dimension_numbers<[1], [0], [0], [1], [0, 0, 1, 1], [], []>} : vector<4x32xbf16>, vector<32x16xbf16>, vector<4x16xf32> -> vector<4x16xf32>
    %73 = arith.addf %70, %72 : vector<4x16xf32>
    %cst_35 = arith.constant dense<0xFF800000> : vector<4xf32>
    %74 = vector.multi_reduction <maximumf>, %73, %cst_35 [1] : vector<4x16xf32> to vector<4xf32>
    %75 = vector.shape_cast %74 : vector<4xf32> to vector<4x1xf32>
    %76 = vector.broadcast %75 : vector<4x1xf32> to vector<4x16xf32>
    %77 = arith.subf %73, %76 : vector<4x16xf32>
    %78 = math.exp %77 : vector<4x16xf32>
    %cst_36 = arith.constant dense<0.000000e+00> : vector<4xf32>
    %79 = vector.multi_reduction <add>, %78, %cst_36 [1] : vector<4x16xf32> to vector<4xf32>
    %80 = vector.shape_cast %79 : vector<4xf32> to vector<4x1xf32>
    %81 = tpu.reciprocal %80 {approx = true} : vector<4x1xf32> -> vector<4x1xf32>
    %82 = vector.broadcast %cst_29 : f32 to vector<4x1xf32>
    %83 = arith.mulf %81, %82 : vector<4x1xf32>
    %84 = vector.broadcast %83 : vector<4x1xf32> to vector<4x16xf32>
    %85 = arith.mulf %78, %84 : vector<4x16xf32>
    %86 = arith.mulf %67, %85 : vector<4x16xf32>
    %87 = arith.truncf %86 : vector<4x16xf32> to vector<4x16xbf16>
    %cst_37 = arith.constant dense<0.000000e+00> : vector<4x128xf32>
    %88 = tpu.matmul %87, %1, %cst_37 {dimension_numbers = #tpu.dot_dimension_numbers<[1], [0], [0], [1], [0, 0, 1, 1], [], []>} : vector<4x16xbf16>, vector<16x128xbf16>, vector<4x128xf32> -> vector<4x128xf32>
    %89 = arith.truncf %37 : vector<4x32xf32> to vector<4x32xbf16>
    %cst_38 = arith.constant dense<0.000000e+00> : vector<4x128xf32>
    %90 = tpu.matmul %89, %2, %cst_38 {dimension_numbers = #tpu.dot_dimension_numbers<[1], [0], [0], [1], [0, 0, 1, 1], [], []>} : vector<4x32xbf16>, vector<32x128xbf16>, vector<4x128xf32> -> vector<4x128xf32>
    %91 = arith.addf %88, %90 : vector<4x128xf32>
    %92 = arith.addf %91, %7 : vector<4x128xf32>
    %93 = arith.negf %92 : vector<4x128xf32>
    %94 = math.exp %93 : vector<4x128xf32>
    %cst_39 = arith.constant 1.000000e+00 : f32
    %95 = vector.broadcast %cst_39 : f32 to vector<4x128xf32>
    %96 = arith.addf %95, %94 : vector<4x128xf32>
    %97 = arith.divf %95, %96 : vector<4x128xf32>
    %98 = vector.extract_strided_slice %97 {offsets = [0, 0], sizes = [4, 32], strides = [1, 1]} : vector<4x128xf32> to vector<4x32xf32>
    %99 = vector.extract_strided_slice %97 {offsets = [0, 32], sizes = [4, 32], strides = [1, 1]} : vector<4x128xf32> to vector<4x32xf32>
    %100 = vector.extract_strided_slice %97 {offsets = [0, 64], sizes = [4, 32], strides = [1, 1]} : vector<4x128xf32> to vector<4x32xf32>
    %cst_40 = arith.constant 2.000000e+00 : f32
    %101 = vector.broadcast %cst_40 : f32 to vector<4x32xf32>
    %102 = arith.mulf %101, %100 : vector<4x32xf32>
    %cst_41 = arith.constant 1.000000e+00 : f32
    %103 = vector.broadcast %cst_41 : f32 to vector<4x32xf32>
    %104 = arith.subf %102, %103 : vector<4x32xf32>
    %105 = vector.extract_strided_slice %97 {offsets = [0, 96], sizes = [4, 32], strides = [1, 1]} : vector<4x128xf32> to vector<4x32xf32>
    %106 = arith.mulf %99, %35 : vector<4x32xf32>
    %107 = arith.mulf %98, %104 : vector<4x32xf32>
    %108 = arith.addf %106, %107 : vector<4x32xf32>
    %109 = math.tanh %108 : vector<4x32xf32>
    %110 = arith.mulf %105, %109 : vector<4x32xf32>
    %111 = arith.truncf %110 : vector<4x32xf32> to vector<4x32xbf16>
    %cst_42 = arith.constant dense<0.000000e+00> : vector<4x128xf32>
    %112 = tpu.matmul %111, %3, %cst_42 {dimension_numbers = #tpu.dot_dimension_numbers<[1], [0], [0], [1], [0, 0, 1, 1], [], []>} : vector<4x32xbf16>, vector<32x128xbf16>, vector<4x128xf32> -> vector<4x128xf32>
    %113 = arith.truncf %61 : vector<4x32xf32> to vector<4x32xbf16>
    %cst_43 = arith.constant dense<0.000000e+00> : vector<4x128xf32>
    %114 = tpu.matmul %113, %4, %cst_43 {dimension_numbers = #tpu.dot_dimension_numbers<[1], [0], [0], [1], [0, 0, 1, 1], [], []>} : vector<4x32xbf16>, vector<32x128xbf16>, vector<4x128xf32> -> vector<4x128xf32>
    %115 = arith.addf %112, %114 : vector<4x128xf32>
    %116 = arith.addf %115, %10 : vector<4x128xf32>
    %117 = arith.negf %116 : vector<4x128xf32>
    %118 = math.exp %117 : vector<4x128xf32>
    %cst_44 = arith.constant 1.000000e+00 : f32
    %119 = vector.broadcast %cst_44 : f32 to vector<4x128xf32>
    %120 = arith.addf %119, %118 : vector<4x128xf32>
    %121 = arith.divf %119, %120 : vector<4x128xf32>
    %122 = vector.extract_strided_slice %121 {offsets = [0, 0], sizes = [4, 32], strides = [1, 1]} : vector<4x128xf32> to vector<4x32xf32>
    %123 = vector.extract_strided_slice %121 {offsets = [0, 32], sizes = [4, 32], strides = [1, 1]} : vector<4x128xf32> to vector<4x32xf32>
    %124 = vector.extract_strided_slice %121 {offsets = [0, 64], sizes = [4, 32], strides = [1, 1]} : vector<4x128xf32> to vector<4x32xf32>
    %cst_45 = arith.constant 2.000000e+00 : f32
    %125 = vector.broadcast %cst_45 : f32 to vector<4x32xf32>
    %126 = arith.mulf %125, %124 : vector<4x32xf32>
    %cst_46 = arith.constant 1.000000e+00 : f32
    %127 = vector.broadcast %cst_46 : f32 to vector<4x32xf32>
    %128 = arith.subf %126, %127 : vector<4x32xf32>
    %129 = vector.extract_strided_slice %121 {offsets = [0, 96], sizes = [4, 32], strides = [1, 1]} : vector<4x128xf32> to vector<4x32xf32>
    %130 = arith.mulf %123, %59 : vector<4x32xf32>
    %131 = arith.mulf %122, %128 : vector<4x32xf32>
    %132 = arith.addf %130, %131 : vector<4x32xf32>
    %133 = math.tanh %132 : vector<4x32xf32>
    %134 = arith.mulf %129, %133 : vector<4x32xf32>
    %135 = arith.index_cast %c1_i32 : i32 to index
    %c0_47 = arith.constant 0 : index
    %c0_48 = arith.constant 0 : index
    %136 = vector.load %arg10[%135, %c0_47, %c0_48] : memref<8x4x32xf32, #tpu.memory_space<vmem>>, vector<1x4x32xf32>
    %137 = vector.shape_cast %136 : vector<1x4x32xf32> to vector<4x32xf32>
    %138 = vector.shape_cast %134 : vector<4x32xf32> to vector<1x4x32xf32>
    tpu.vector_store %arg10[%135, %c0_47, %c0_48], %138 {strides = array<i32>} : memref<8x4x32xf32, #tpu.memory_space<vmem>>, vector<1x4x32xf32>,
    %c2_i32 = arith.constant 2 : i32
    %139 = arith.index_cast %c2_i32 : i32 to index
    %c0_49 = arith.constant 0 : index
    %c0_50 = arith.constant 0 : index
    %140 = vector.load %arg1[%139, %c0_49, %c0_50] : memref<8x4x16xf32, #tpu.memory_space<vmem>>, vector<1x4x16xf32>
    %141 = vector.shape_cast %140 : vector<1x4x16xf32> to vector<4x16xf32>
    %142 = arith.index_cast %c2_i32 : i32 to index
    %c0_51 = arith.constant 0 : index
    %c0_52 = arith.constant 0 : index
    %143 = vector.load %arg2[%142, %c0_51, %c0_52] : memref<8x4x16xf32, #tpu.memory_space<vmem>>, vector<1x4x16xf32>
    %144 = vector.shape_cast %143 : vector<1x4x16xf32> to vector<4x16xf32>
    %145 = arith.truncf %134 : vector<4x32xf32> to vector<4x32xbf16>
    %cst_53 = arith.constant dense<0.000000e+00> : vector<4x16xf32>
    %146 = tpu.matmul %145, %0, %cst_53 {dimension_numbers = #tpu.dot_dimension_numbers<[1], [0], [0], [1], [0, 0, 1, 1], [], []>} : vector<4x32xbf16>, vector<32x16xbf16>, vector<4x16xf32> -> vector<4x16xf32>
    %147 = arith.addf %144, %146 : vector<4x16xf32>
    %cst_54 = arith.constant dense<0xFF800000> : vector<4xf32>
    %148 = vector.multi_reduction <maximumf>, %147, %cst_54 [1] : vector<4x16xf32> to vector<4xf32>
    %149 = vector.shape_cast %148 : vector<4xf32> to vector<4x1xf32>
    %150 = vector.broadcast %149 : vector<4x1xf32> to vector<4x16xf32>
    %151 = arith.subf %147, %150 : vector<4x16xf32>
    %152 = math.exp %151 : vector<4x16xf32>
    %cst_55 = arith.constant dense<0.000000e+00> : vector<4xf32>
    %153 = vector.multi_reduction <add>, %152, %cst_55 [1] : vector<4x16xf32> to vector<4xf32>
    %154 = vector.shape_cast %153 : vector<4xf32> to vector<4x1xf32>
    %155 = tpu.reciprocal %154 {approx = true} : vector<4x1xf32> -> vector<4x1xf32>
    %156 = vector.broadcast %cst_29 : f32 to vector<4x1xf32>
    %157 = arith.mulf %155, %156 : vector<4x1xf32>
    %158 = vector.broadcast %157 : vector<4x1xf32> to vector<4x16xf32>
    %159 = arith.mulf %152, %158 : vector<4x16xf32>
    %160 = arith.mulf %141, %159 : vector<4x16xf32>
    %161 = arith.truncf %160 : vector<4x16xf32> to vector<4x16xbf16>
    %cst_56 = arith.constant dense<0.000000e+00> : vector<4x128xf32>
    %162 = tpu.matmul %161, %1, %cst_56 {dimension_numbers = #tpu.dot_dimension_numbers<[1], [0], [0], [1], [0, 0, 1, 1], [], []>} : vector<4x16xbf16>, vector<16x128xbf16>, vector<4x128xf32> -> vector<4x128xf32>
    %163 = arith.truncf %110 : vector<4x32xf32> to vector<4x32xbf16>
    %cst_57 = arith.constant dense<0.000000e+00> : vector<4x128xf32>
    %164 = tpu.matmul %163, %2, %cst_57 {dimension_numbers = #tpu.dot_dimension_numbers<[1], [0], [0], [1], [0, 0, 1, 1], [], []>} : vector<4x32xbf16>, vector<32x128xbf16>, vector<4x128xf32> -> vector<4x128xf32>
    %165 = arith.addf %162, %164 : vector<4x128xf32>
    %166 = arith.addf %165, %7 : vector<4x128xf32>
    %167 = arith.negf %166 : vector<4x128xf32>
    %168 = math.exp %167 : vector<4x128xf32>
    %cst_58 = arith.constant 1.000000e+00 : f32
    %169 = vector.broadcast %cst_58 : f32 to vector<4x128xf32>
    %170 = arith.addf %169, %168 : vector<4x128xf32>
    %171 = arith.divf %169, %170 : vector<4x128xf32>
    %172 = vector.extract_strided_slice %171 {offsets = [0, 0], sizes = [4, 32], strides = [1, 1]} : vector<4x128xf32> to vector<4x32xf32>
    %173 = vector.extract_strided_slice %171 {offsets = [0, 32], sizes = [4, 32], strides = [1, 1]} : vector<4x128xf32> to vector<4x32xf32>
    %174 = vector.extract_strided_slice %171 {offsets = [0, 64], sizes = [4, 32], strides = [1, 1]} : vector<4x128xf32> to vector<4x32xf32>
    %cst_59 = arith.constant 2.000000e+00 : f32
    %175 = vector.broadcast %cst_59 : f32 to vector<4x32xf32>
    %176 = arith.mulf %175, %174 : vector<4x32xf32>
    %cst_60 = arith.constant 1.000000e+00 : f32
    %177 = vector.broadcast %cst_60 : f32 to vector<4x32xf32>
    %178 = arith.subf %176, %177 : vector<4x32xf32>
    %179 = vector.extract_strided_slice %171 {offsets = [0, 96], sizes = [4, 32], strides = [1, 1]} : vector<4x128xf32> to vector<4x32xf32>
    %180 = arith.mulf %173, %108 : vector<4x32xf32>
    %181 = arith.mulf %172, %178 : vector<4x32xf32>
    %182 = arith.addf %180, %181 : vector<4x32xf32>
    %183 = math.tanh %182 : vector<4x32xf32>
    %184 = arith.mulf %179, %183 : vector<4x32xf32>
    %185 = arith.truncf %184 : vector<4x32xf32> to vector<4x32xbf16>
    %cst_61 = arith.constant dense<0.000000e+00> : vector<4x128xf32>
    %186 = tpu.matmul %185, %3, %cst_61 {dimension_numbers = #tpu.dot_dimension_numbers<[1], [0], [0], [1], [0, 0, 1, 1], [], []>} : vector<4x32xbf16>, vector<32x128xbf16>, vector<4x128xf32> -> vector<4x128xf32>
    %187 = arith.truncf %134 : vector<4x32xf32> to vector<4x32xbf16>
    %cst_62 = arith.constant dense<0.000000e+00> : vector<4x128xf32>
    %188 = tpu.matmul %187, %4, %cst_62 {dimension_numbers = #tpu.dot_dimension_numbers<[1], [0], [0], [1], [0, 0, 1, 1], [], []>} : vector<4x32xbf16>, vector<32x128xbf16>, vector<4x128xf32> -> vector<4x128xf32>
    %189 = arith.addf %186, %188 : vector<4x128xf32>
    %190 = arith.addf %189, %10 : vector<4x128xf32>
    %191 = arith.negf %190 : vector<4x128xf32>
    %192 = math.exp %191 : vector<4x128xf32>
    %cst_63 = arith.constant 1.000000e+00 : f32
    %193 = vector.broadcast %cst_63 : f32 to vector<4x128xf32>
    %194 = arith.addf %193, %192 : vector<4x128xf32>
    %195 = arith.divf %193, %194 : vector<4x128xf32>
    %196 = vector.extract_strided_slice %195 {offsets = [0, 0], sizes = [4, 32], strides = [1, 1]} : vector<4x128xf32> to vector<4x32xf32>
    %197 = vector.extract_strided_slice %195 {offsets = [0, 32], sizes = [4, 32], strides = [1, 1]} : vector<4x128xf32> to vector<4x32xf32>
    %198 = vector.extract_strided_slice %195 {offsets = [0, 64], sizes = [4, 32], strides = [1, 1]} : vector<4x128xf32> to vector<4x32xf32>
    %cst_64 = arith.constant 2.000000e+00 : f32
    %199 = vector.broadcast %cst_64 : f32 to vector<4x32xf32>
    %200 = arith.mulf %199, %198 : vector<4x32xf32>
    %cst_65 = arith.constant 1.000000e+00 : f32
    %201 = vector.broadcast %cst_65 : f32 to vector<4x32xf32>
    %202 = arith.subf %200, %201 : vector<4x32xf32>
    %203 = vector.extract_strided_slice %195 {offsets = [0, 96], sizes = [4, 32], strides = [1, 1]} : vector<4x128xf32> to vector<4x32xf32>
    %204 = arith.mulf %197, %132 : vector<4x32xf32>
    %205 = arith.mulf %196, %202 : vector<4x32xf32>
    %206 = arith.addf %204, %205 : vector<4x32xf32>
    %207 = math.tanh %206 : vector<4x32xf32>
    %208 = arith.mulf %203, %207 : vector<4x32xf32>
    %209 = arith.index_cast %c2_i32 : i32 to index
    %c0_66 = arith.constant 0 : index
    %c0_67 = arith.constant 0 : index
    %210 = vector.load %arg10[%209, %c0_66, %c0_67] : memref<8x4x32xf32, #tpu.memory_space<vmem>>, vector<1x4x32xf32>
    %211 = vector.shape_cast %210 : vector<1x4x32xf32> to vector<4x32xf32>
    %212 = vector.shape_cast %208 : vector<4x32xf32> to vector<1x4x32xf32>
    tpu.vector_store %arg10[%209, %c0_66, %c0_67], %212 {strides = array<i32>} : memref<8x4x32xf32, #tpu.memory_space<vmem>>, vector<1x4x32xf32>,
    %c3_i32 = arith.constant 3 : i32
    %213 = arith.index_cast %c3_i32 : i32 to index
    %c0_68 = arith.constant 0 : index
    %c0_69 = arith.constant 0 : index
    %214 = vector.load %arg1[%213, %c0_68, %c0_69] : memref<8x4x16xf32, #tpu.memory_space<vmem>>, vector<1x4x16xf32>
    %215 = vector.shape_cast %214 : vector<1x4x16xf32> to vector<4x16xf32>
    %216 = arith.index_cast %c3_i32 : i32 to index
    %c0_70 = arith.constant 0 : index
    %c0_71 = arith.constant 0 : index
    %217 = vector.load %arg2[%216, %c0_70, %c0_71] : memref<8x4x16xf32, #tpu.memory_space<vmem>>, vector<1x4x16xf32>
    %218 = vector.shape_cast %217 : vector<1x4x16xf32> to vector<4x16xf32>
    %219 = arith.truncf %208 : vector<4x32xf32> to vector<4x32xbf16>
    %cst_72 = arith.constant dense<0.000000e+00> : vector<4x16xf32>
    %220 = tpu.matmul %219, %0, %cst_72 {dimension_numbers = #tpu.dot_dimension_numbers<[1], [0], [0], [1], [0, 0, 1, 1], [], []>} : vector<4x32xbf16>, vector<32x16xbf16>, vector<4x16xf32> -> vector<4x16xf32>
    %221 = arith.addf %218, %220 : vector<4x16xf32>
    %cst_73 = arith.constant dense<0xFF800000> : vector<4xf32>
    %222 = vector.multi_reduction <maximumf>, %221, %cst_73 [1] : vector<4x16xf32> to vector<4xf32>
    %223 = vector.shape_cast %222 : vector<4xf32> to vector<4x1xf32>
    %224 = vector.broadcast %223 : vector<4x1xf32> to vector<4x16xf32>
    %225 = arith.subf %221, %224 : vector<4x16xf32>
    %226 = math.exp %225 : vector<4x16xf32>
    %cst_74 = arith.constant dense<0.000000e+00> : vector<4xf32>
    %227 = vector.multi_reduction <add>, %226, %cst_74 [1] : vector<4x16xf32> to vector<4xf32>
    %228 = vector.shape_cast %227 : vector<4xf32> to vector<4x1xf32>
    %229 = tpu.reciprocal %228 {approx = true} : vector<4x1xf32> -> vector<4x1xf32>
    %230 = vector.broadcast %cst_29 : f32 to vector<4x1xf32>
    %231 = arith.mulf %229, %230 : vector<4x1xf32>
    %232 = vector.broadcast %231 : vector<4x1xf32> to vector<4x16xf32>
    %233 = arith.mulf %226, %232 : vector<4x16xf32>
    %234 = arith.mulf %215, %233 : vector<4x16xf32>
    %235 = arith.truncf %234 : vector<4x16xf32> to vector<4x16xbf16>
    %cst_75 = arith.constant dense<0.000000e+00> : vector<4x128xf32>
    %236 = tpu.matmul %235, %1, %cst_75 {dimension_numbers = #tpu.dot_dimension_numbers<[1], [0], [0], [1], [0, 0, 1, 1], [], []>} : vector<4x16xbf16>, vector<16x128xbf16>, vector<4x128xf32> -> vector<4x128xf32>
    %237 = arith.truncf %184 : vector<4x32xf32> to vector<4x32xbf16>
    %cst_76 = arith.constant dense<0.000000e+00> : vector<4x128xf32>
    %238 = tpu.matmul %237, %2, %cst_76 {dimension_numbers = #tpu.dot_dimension_numbers<[1], [0], [0], [1], [0, 0, 1, 1], [], []>} : vector<4x32xbf16>, vector<32x128xbf16>, vector<4x128xf32> -> vector<4x128xf32>
    %239 = arith.addf %236, %238 : vector<4x128xf32>
    %240 = arith.addf %239, %7 : vector<4x128xf32>
    %241 = arith.negf %240 : vector<4x128xf32>
    %242 = math.exp %241 : vector<4x128xf32>
    %cst_77 = arith.constant 1.000000e+00 : f32
    %243 = vector.broadcast %cst_77 : f32 to vector<4x128xf32>
    %244 = arith.addf %243, %242 : vector<4x128xf32>
    %245 = arith.divf %243, %244 : vector<4x128xf32>
    %246 = vector.extract_strided_slice %245 {offsets = [0, 0], sizes = [4, 32], strides = [1, 1]} : vector<4x128xf32> to vector<4x32xf32>
    %247 = vector.extract_strided_slice %245 {offsets = [0, 32], sizes = [4, 32], strides = [1, 1]} : vector<4x128xf32> to vector<4x32xf32>
    %248 = vector.extract_strided_slice %245 {offsets = [0, 64], sizes = [4, 32], strides = [1, 1]} : vector<4x128xf32> to vector<4x32xf32>
    %cst_78 = arith.constant 2.000000e+00 : f32
    %249 = vector.broadcast %cst_78 : f32 to vector<4x32xf32>
    %250 = arith.mulf %249, %248 : vector<4x32xf32>
    %cst_79 = arith.constant 1.000000e+00 : f32
    %251 = vector.broadcast %cst_79 : f32 to vector<4x32xf32>
    %252 = arith.subf %250, %251 : vector<4x32xf32>
    %253 = vector.extract_strided_slice %245 {offsets = [0, 96], sizes = [4, 32], strides = [1, 1]} : vector<4x128xf32> to vector<4x32xf32>
    %254 = arith.mulf %247, %182 : vector<4x32xf32>
    %255 = arith.mulf %246, %252 : vector<4x32xf32>
    %256 = arith.addf %254, %255 : vector<4x32xf32>
    %257 = math.tanh %256 : vector<4x32xf32>
    %258 = arith.mulf %253, %257 : vector<4x32xf32>
    %259 = arith.truncf %258 : vector<4x32xf32> to vector<4x32xbf16>
    %cst_80 = arith.constant dense<0.000000e+00> : vector<4x128xf32>
    %260 = tpu.matmul %259, %3, %cst_80 {dimension_numbers = #tpu.dot_dimension_numbers<[1], [0], [0], [1], [0, 0, 1, 1], [], []>} : vector<4x32xbf16>, vector<32x128xbf16>, vector<4x128xf32> -> vector<4x128xf32>
    %261 = arith.truncf %208 : vector<4x32xf32> to vector<4x32xbf16>
    %cst_81 = arith.constant dense<0.000000e+00> : vector<4x128xf32>
    %262 = tpu.matmul %261, %4, %cst_81 {dimension_numbers = #tpu.dot_dimension_numbers<[1], [0], [0], [1], [0, 0, 1, 1], [], []>} : vector<4x32xbf16>, vector<32x128xbf16>, vector<4x128xf32> -> vector<4x128xf32>
    %263 = arith.addf %260, %262 : vector<4x128xf32>
    %264 = arith.addf %263, %10 : vector<4x128xf32>
    %265 = arith.negf %264 : vector<4x128xf32>
    %266 = math.exp %265 : vector<4x128xf32>
    %cst_82 = arith.constant 1.000000e+00 : f32
    %267 = vector.broadcast %cst_82 : f32 to vector<4x128xf32>
    %268 = arith.addf %267, %266 : vector<4x128xf32>
    %269 = arith.divf %267, %268 : vector<4x128xf32>
    %270 = vector.extract_strided_slice %269 {offsets = [0, 0], sizes = [4, 32], strides = [1, 1]} : vector<4x128xf32> to vector<4x32xf32>
    %271 = vector.extract_strided_slice %269 {offsets = [0, 32], sizes = [4, 32], strides = [1, 1]} : vector<4x128xf32> to vector<4x32xf32>
    %272 = vector.extract_strided_slice %269 {offsets = [0, 64], sizes = [4, 32], strides = [1, 1]} : vector<4x128xf32> to vector<4x32xf32>
    %cst_83 = arith.constant 2.000000e+00 : f32
    %273 = vector.broadcast %cst_83 : f32 to vector<4x32xf32>
    %274 = arith.mulf %273, %272 : vector<4x32xf32>
    %cst_84 = arith.constant 1.000000e+00 : f32
    %275 = vector.broadcast %cst_84 : f32 to vector<4x32xf32>
    %276 = arith.subf %274, %275 : vector<4x32xf32>
    %277 = vector.extract_strided_slice %269 {offsets = [0, 96], sizes = [4, 32], strides = [1, 1]} : vector<4x128xf32> to vector<4x32xf32>
    %278 = arith.mulf %271, %206 : vector<4x32xf32>
    %279 = arith.mulf %270, %276 : vector<4x32xf32>
    %280 = arith.addf %278, %279 : vector<4x32xf32>
    %281 = math.tanh %280 : vector<4x32xf32>
    %282 = arith.mulf %277, %281 : vector<4x32xf32>
    %283 = arith.index_cast %c3_i32 : i32 to index
    %c0_85 = arith.constant 0 : index
    %c0_86 = arith.constant 0 : index
    %284 = vector.load %arg10[%283, %c0_85, %c0_86] : memref<8x4x32xf32, #tpu.memory_space<vmem>>, vector<1x4x32xf32>
    %285 = vector.shape_cast %284 : vector<1x4x32xf32> to vector<4x32xf32>
    %286 = vector.shape_cast %282 : vector<4x32xf32> to vector<1x4x32xf32>
    tpu.vector_store %arg10[%283, %c0_85, %c0_86], %286 {strides = array<i32>} : memref<8x4x32xf32, #tpu.memory_space<vmem>>, vector<1x4x32xf32>,
    %c4_i32 = arith.constant 4 : i32
    %287 = arith.index_cast %c4_i32 : i32 to index
    %c0_87 = arith.constant 0 : index
    %c0_88 = arith.constant 0 : index
    %288 = vector.load %arg1[%287, %c0_87, %c0_88] : memref<8x4x16xf32, #tpu.memory_space<vmem>>, vector<1x4x16xf32>
    %289 = vector.shape_cast %288 : vector<1x4x16xf32> to vector<4x16xf32>
    %290 = arith.index_cast %c4_i32 : i32 to index
    %c0_89 = arith.constant 0 : index
    %c0_90 = arith.constant 0 : index
    %291 = vector.load %arg2[%290, %c0_89, %c0_90] : memref<8x4x16xf32, #tpu.memory_space<vmem>>, vector<1x4x16xf32>
    %292 = vector.shape_cast %291 : vector<1x4x16xf32> to vector<4x16xf32>
    %293 = arith.truncf %282 : vector<4x32xf32> to vector<4x32xbf16>
    %cst_91 = arith.constant dense<0.000000e+00> : vector<4x16xf32>
    %294 = tpu.matmul %293, %0, %cst_91 {dimension_numbers = #tpu.dot_dimension_numbers<[1], [0], [0], [1], [0, 0, 1, 1], [], []>} : vector<4x32xbf16>, vector<32x16xbf16>, vector<4x16xf32> -> vector<4x16xf32>
    %295 = arith.addf %292, %294 : vector<4x16xf32>
    %cst_92 = arith.constant dense<0xFF800000> : vector<4xf32>
    %296 = vector.multi_reduction <maximumf>, %295, %cst_92 [1] : vector<4x16xf32> to vector<4xf32>
    %297 = vector.shape_cast %296 : vector<4xf32> to vector<4x1xf32>
    %298 = vector.broadcast %297 : vector<4x1xf32> to vector<4x16xf32>
    %299 = arith.subf %295, %298 : vector<4x16xf32>
    %300 = math.exp %299 : vector<4x16xf32>
    %cst_93 = arith.constant dense<0.000000e+00> : vector<4xf32>
    %301 = vector.multi_reduction <add>, %300, %cst_93 [1] : vector<4x16xf32> to vector<4xf32>
    %302 = vector.shape_cast %301 : vector<4xf32> to vector<4x1xf32>
    %303 = tpu.reciprocal %302 {approx = true} : vector<4x1xf32> -> vector<4x1xf32>
    %304 = vector.broadcast %cst_29 : f32 to vector<4x1xf32>
    %305 = arith.mulf %303, %304 : vector<4x1xf32>
    %306 = vector.broadcast %305 : vector<4x1xf32> to vector<4x16xf32>
    %307 = arith.mulf %300, %306 : vector<4x16xf32>
    %308 = arith.mulf %289, %307 : vector<4x16xf32>
    %309 = arith.truncf %308 : vector<4x16xf32> to vector<4x16xbf16>
    %cst_94 = arith.constant dense<0.000000e+00> : vector<4x128xf32>
    %310 = tpu.matmul %309, %1, %cst_94 {dimension_numbers = #tpu.dot_dimension_numbers<[1], [0], [0], [1], [0, 0, 1, 1], [], []>} : vector<4x16xbf16>, vector<16x128xbf16>, vector<4x128xf32> -> vector<4x128xf32>
    %311 = arith.truncf %258 : vector<4x32xf32> to vector<4x32xbf16>
    %cst_95 = arith.constant dense<0.000000e+00> : vector<4x128xf32>
    %312 = tpu.matmul %311, %2, %cst_95 {dimension_numbers = #tpu.dot_dimension_numbers<[1], [0], [0], [1], [0, 0, 1, 1], [], []>} : vector<4x32xbf16>, vector<32x128xbf16>, vector<4x128xf32> -> vector<4x128xf32>
    %313 = arith.addf %310, %312 : vector<4x128xf32>
    %314 = arith.addf %313, %7 : vector<4x128xf32>
    %315 = arith.negf %314 : vector<4x128xf32>
    %316 = math.exp %315 : vector<4x128xf32>
    %cst_96 = arith.constant 1.000000e+00 : f32
    %317 = vector.broadcast %cst_96 : f32 to vector<4x128xf32>
    %318 = arith.addf %317, %316 : vector<4x128xf32>
    %319 = arith.divf %317, %318 : vector<4x128xf32>
    %320 = vector.extract_strided_slice %319 {offsets = [0, 0], sizes = [4, 32], strides = [1, 1]} : vector<4x128xf32> to vector<4x32xf32>
    %321 = vector.extract_strided_slice %319 {offsets = [0, 32], sizes = [4, 32], strides = [1, 1]} : vector<4x128xf32> to vector<4x32xf32>
    %322 = vector.extract_strided_slice %319 {offsets = [0, 64], sizes = [4, 32], strides = [1, 1]} : vector<4x128xf32> to vector<4x32xf32>
    %cst_97 = arith.constant 2.000000e+00 : f32
    %323 = vector.broadcast %cst_97 : f32 to vector<4x32xf32>
    %324 = arith.mulf %323, %322 : vector<4x32xf32>
    %cst_98 = arith.constant 1.000000e+00 : f32
    %325 = vector.broadcast %cst_98 : f32 to vector<4x32xf32>
    %326 = arith.subf %324, %325 : vector<4x32xf32>
    %327 = vector.extract_strided_slice %319 {offsets = [0, 96], sizes = [4, 32], strides = [1, 1]} : vector<4x128xf32> to vector<4x32xf32>
    %328 = arith.mulf %321, %256 : vector<4x32xf32>
    %329 = arith.mulf %320, %326 : vector<4x32xf32>
    %330 = arith.addf %328, %329 : vector<4x32xf32>
    %331 = math.tanh %330 : vector<4x32xf32>
    %332 = arith.mulf %327, %331 : vector<4x32xf32>
    %333 = arith.truncf %332 : vector<4x32xf32> to vector<4x32xbf16>
    %cst_99 = arith.constant dense<0.000000e+00> : vector<4x128xf32>
    %334 = tpu.matmul %333, %3, %cst_99 {dimension_numbers = #tpu.dot_dimension_numbers<[1], [0], [0], [1], [0, 0, 1, 1], [], []>} : vector<4x32xbf16>, vector<32x128xbf16>, vector<4x128xf32> -> vector<4x128xf32>
    %335 = arith.truncf %282 : vector<4x32xf32> to vector<4x32xbf16>
    %cst_100 = arith.constant dense<0.000000e+00> : vector<4x128xf32>
    %336 = tpu.matmul %335, %4, %cst_100 {dimension_numbers = #tpu.dot_dimension_numbers<[1], [0], [0], [1], [0, 0, 1, 1], [], []>} : vector<4x32xbf16>, vector<32x128xbf16>, vector<4x128xf32> -> vector<4x128xf32>
    %337 = arith.addf %334, %336 : vector<4x128xf32>
    %338 = arith.addf %337, %10 : vector<4x128xf32>
    %339 = arith.negf %338 : vector<4x128xf32>
    %340 = math.exp %339 : vector<4x128xf32>
    %cst_101 = arith.constant 1.000000e+00 : f32
    %341 = vector.broadcast %cst_101 : f32 to vector<4x128xf32>
    %342 = arith.addf %341, %340 : vector<4x128xf32>
    %343 = arith.divf %341, %342 : vector<4x128xf32>
    %344 = vector.extract_strided_slice %343 {offsets = [0, 0], sizes = [4, 32], strides = [1, 1]} : vector<4x128xf32> to vector<4x32xf32>
    %345 = vector.extract_strided_slice %343 {offsets = [0, 32], sizes = [4, 32], strides = [1, 1]} : vector<4x128xf32> to vector<4x32xf32>
    %346 = vector.extract_strided_slice %343 {offsets = [0, 64], sizes = [4, 32], strides = [1, 1]} : vector<4x128xf32> to vector<4x32xf32>
    %cst_102 = arith.constant 2.000000e+00 : f32
    %347 = vector.broadcast %cst_102 : f32 to vector<4x32xf32>
    %348 = arith.mulf %347, %346 : vector<4x32xf32>
    %cst_103 = arith.constant 1.000000e+00 : f32
    %349 = vector.broadcast %cst_103 : f32 to vector<4x32xf32>
    %350 = arith.subf %348, %349 : vector<4x32xf32>
    %351 = vector.extract_strided_slice %343 {offsets = [0, 96], sizes = [4, 32], strides = [1, 1]} : vector<4x128xf32> to vector<4x32xf32>
    %352 = arith.mulf %345, %280 : vector<4x32xf32>
    %353 = arith.mulf %344, %350 : vector<4x32xf32>
    %354 = arith.addf %352, %353 : vector<4x32xf32>
    %355 = math.tanh %354 : vector<4x32xf32>
    %356 = arith.mulf %351, %355 : vector<4x32xf32>
    %357 = arith.index_cast %c4_i32 : i32 to index
    %c0_104 = arith.constant 0 : index
    %c0_105 = arith.constant 0 : index
    %358 = vector.load %arg10[%357, %c0_104, %c0_105] : memref<8x4x32xf32, #tpu.memory_space<vmem>>, vector<1x4x32xf32>
    %359 = vector.shape_cast %358 : vector<1x4x32xf32> to vector<4x32xf32>
    %360 = vector.shape_cast %356 : vector<4x32xf32> to vector<1x4x32xf32>
    tpu.vector_store %arg10[%357, %c0_104, %c0_105], %360 {strides = array<i32>} : memref<8x4x32xf32, #tpu.memory_space<vmem>>, vector<1x4x32xf32>,
    %c5_i32 = arith.constant 5 : i32
    %361 = arith.index_cast %c5_i32 : i32 to index
    %c0_106 = arith.constant 0 : index
    %c0_107 = arith.constant 0 : index
    %362 = vector.load %arg1[%361, %c0_106, %c0_107] : memref<8x4x16xf32, #tpu.memory_space<vmem>>, vector<1x4x16xf32>
    %363 = vector.shape_cast %362 : vector<1x4x16xf32> to vector<4x16xf32>
    %364 = arith.index_cast %c5_i32 : i32 to index
    %c0_108 = arith.constant 0 : index
    %c0_109 = arith.constant 0 : index
    %365 = vector.load %arg2[%364, %c0_108, %c0_109] : memref<8x4x16xf32, #tpu.memory_space<vmem>>, vector<1x4x16xf32>
    %366 = vector.shape_cast %365 : vector<1x4x16xf32> to vector<4x16xf32>
    %367 = arith.truncf %356 : vector<4x32xf32> to vector<4x32xbf16>
    %cst_110 = arith.constant dense<0.000000e+00> : vector<4x16xf32>
    %368 = tpu.matmul %367, %0, %cst_110 {dimension_numbers = #tpu.dot_dimension_numbers<[1], [0], [0], [1], [0, 0, 1, 1], [], []>} : vector<4x32xbf16>, vector<32x16xbf16>, vector<4x16xf32> -> vector<4x16xf32>
    %369 = arith.addf %366, %368 : vector<4x16xf32>
    %cst_111 = arith.constant dense<0xFF800000> : vector<4xf32>
    %370 = vector.multi_reduction <maximumf>, %369, %cst_111 [1] : vector<4x16xf32> to vector<4xf32>
    %371 = vector.shape_cast %370 : vector<4xf32> to vector<4x1xf32>
    %372 = vector.broadcast %371 : vector<4x1xf32> to vector<4x16xf32>
    %373 = arith.subf %369, %372 : vector<4x16xf32>
    %374 = math.exp %373 : vector<4x16xf32>
    %cst_112 = arith.constant dense<0.000000e+00> : vector<4xf32>
    %375 = vector.multi_reduction <add>, %374, %cst_112 [1] : vector<4x16xf32> to vector<4xf32>
    %376 = vector.shape_cast %375 : vector<4xf32> to vector<4x1xf32>
    %377 = tpu.reciprocal %376 {approx = true} : vector<4x1xf32> -> vector<4x1xf32>
    %378 = vector.broadcast %cst_29 : f32 to vector<4x1xf32>
    %379 = arith.mulf %377, %378 : vector<4x1xf32>
    %380 = vector.broadcast %379 : vector<4x1xf32> to vector<4x16xf32>
    %381 = arith.mulf %374, %380 : vector<4x16xf32>
    %382 = arith.mulf %363, %381 : vector<4x16xf32>
    %383 = arith.truncf %382 : vector<4x16xf32> to vector<4x16xbf16>
    %cst_113 = arith.constant dense<0.000000e+00> : vector<4x128xf32>
    %384 = tpu.matmul %383, %1, %cst_113 {dimension_numbers = #tpu.dot_dimension_numbers<[1], [0], [0], [1], [0, 0, 1, 1], [], []>} : vector<4x16xbf16>, vector<16x128xbf16>, vector<4x128xf32> -> vector<4x128xf32>
    %385 = arith.truncf %332 : vector<4x32xf32> to vector<4x32xbf16>
    %cst_114 = arith.constant dense<0.000000e+00> : vector<4x128xf32>
    %386 = tpu.matmul %385, %2, %cst_114 {dimension_numbers = #tpu.dot_dimension_numbers<[1], [0], [0], [1], [0, 0, 1, 1], [], []>} : vector<4x32xbf16>, vector<32x128xbf16>, vector<4x128xf32> -> vector<4x128xf32>
    %387 = arith.addf %384, %386 : vector<4x128xf32>
    %388 = arith.addf %387, %7 : vector<4x128xf32>
    %389 = arith.negf %388 : vector<4x128xf32>
    %390 = math.exp %389 : vector<4x128xf32>
    %cst_115 = arith.constant 1.000000e+00 : f32
    %391 = vector.broadcast %cst_115 : f32 to vector<4x128xf32>
    %392 = arith.addf %391, %390 : vector<4x128xf32>
    %393 = arith.divf %391, %392 : vector<4x128xf32>
    %394 = vector.extract_strided_slice %393 {offsets = [0, 0], sizes = [4, 32], strides = [1, 1]} : vector<4x128xf32> to vector<4x32xf32>
    %395 = vector.extract_strided_slice %393 {offsets = [0, 32], sizes = [4, 32], strides = [1, 1]} : vector<4x128xf32> to vector<4x32xf32>
    %396 = vector.extract_strided_slice %393 {offsets = [0, 64], sizes = [4, 32], strides = [1, 1]} : vector<4x128xf32> to vector<4x32xf32>
    %cst_116 = arith.constant 2.000000e+00 : f32
    %397 = vector.broadcast %cst_116 : f32 to vector<4x32xf32>
    %398 = arith.mulf %397, %396 : vector<4x32xf32>
    %cst_117 = arith.constant 1.000000e+00 : f32
    %399 = vector.broadcast %cst_117 : f32 to vector<4x32xf32>
    %400 = arith.subf %398, %399 : vector<4x32xf32>
    %401 = vector.extract_strided_slice %393 {offsets = [0, 96], sizes = [4, 32], strides = [1, 1]} : vector<4x128xf32> to vector<4x32xf32>
    %402 = arith.mulf %395, %330 : vector<4x32xf32>
    %403 = arith.mulf %394, %400 : vector<4x32xf32>
    %404 = arith.addf %402, %403 : vector<4x32xf32>
    %405 = math.tanh %404 : vector<4x32xf32>
    %406 = arith.mulf %401, %405 : vector<4x32xf32>
    %407 = arith.truncf %406 : vector<4x32xf32> to vector<4x32xbf16>
    %cst_118 = arith.constant dense<0.000000e+00> : vector<4x128xf32>
    %408 = tpu.matmul %407, %3, %cst_118 {dimension_numbers = #tpu.dot_dimension_numbers<[1], [0], [0], [1], [0, 0, 1, 1], [], []>} : vector<4x32xbf16>, vector<32x128xbf16>, vector<4x128xf32> -> vector<4x128xf32>
    %409 = arith.truncf %356 : vector<4x32xf32> to vector<4x32xbf16>
    %cst_119 = arith.constant dense<0.000000e+00> : vector<4x128xf32>
    %410 = tpu.matmul %409, %4, %cst_119 {dimension_numbers = #tpu.dot_dimension_numbers<[1], [0], [0], [1], [0, 0, 1, 1], [], []>} : vector<4x32xbf16>, vector<32x128xbf16>, vector<4x128xf32> -> vector<4x128xf32>
    %411 = arith.addf %408, %410 : vector<4x128xf32>
    %412 = arith.addf %411, %10 : vector<4x128xf32>
    %413 = arith.negf %412 : vector<4x128xf32>
    %414 = math.exp %413 : vector<4x128xf32>
    %cst_120 = arith.constant 1.000000e+00 : f32
    %415 = vector.broadcast %cst_120 : f32 to vector<4x128xf32>
    %416 = arith.addf %415, %414 : vector<4x128xf32>
    %417 = arith.divf %415, %416 : vector<4x128xf32>
    %418 = vector.extract_strided_slice %417 {offsets = [0, 0], sizes = [4, 32], strides = [1, 1]} : vector<4x128xf32> to vector<4x32xf32>
    %419 = vector.extract_strided_slice %417 {offsets = [0, 32], sizes = [4, 32], strides = [1, 1]} : vector<4x128xf32> to vector<4x32xf32>
    %420 = vector.extract_strided_slice %417 {offsets = [0, 64], sizes = [4, 32], strides = [1, 1]} : vector<4x128xf32> to vector<4x32xf32>
    %cst_121 = arith.constant 2.000000e+00 : f32
    %421 = vector.broadcast %cst_121 : f32 to vector<4x32xf32>
    %422 = arith.mulf %421, %420 : vector<4x32xf32>
    %cst_122 = arith.constant 1.000000e+00 : f32
    %423 = vector.broadcast %cst_122 : f32 to vector<4x32xf32>
    %424 = arith.subf %422, %423 : vector<4x32xf32>
    %425 = vector.extract_strided_slice %417 {offsets = [0, 96], sizes = [4, 32], strides = [1, 1]} : vector<4x128xf32> to vector<4x32xf32>
    %426 = arith.mulf %419, %354 : vector<4x32xf32>
    %427 = arith.mulf %418, %424 : vector<4x32xf32>
    %428 = arith.addf %426, %427 : vector<4x32xf32>
    %429 = math.tanh %428 : vector<4x32xf32>
    %430 = arith.mulf %425, %429 : vector<4x32xf32>
    %431 = arith.index_cast %c5_i32 : i32 to index
    %c0_123 = arith.constant 0 : index
    %c0_124 = arith.constant 0 : index
    %432 = vector.load %arg10[%431, %c0_123, %c0_124] : memref<8x4x32xf32, #tpu.memory_space<vmem>>, vector<1x4x32xf32>
    %433 = vector.shape_cast %432 : vector<1x4x32xf32> to vector<4x32xf32>
    %434 = vector.shape_cast %430 : vector<4x32xf32> to vector<1x4x32xf32>
    tpu.vector_store %arg10[%431, %c0_123, %c0_124], %434 {strides = array<i32>} : memref<8x4x32xf32, #tpu.memory_space<vmem>>, vector<1x4x32xf32>,
    %c6_i32 = arith.constant 6 : i32
    %435 = arith.index_cast %c6_i32 : i32 to index
    %c0_125 = arith.constant 0 : index
    %c0_126 = arith.constant 0 : index
    %436 = vector.load %arg1[%435, %c0_125, %c0_126] : memref<8x4x16xf32, #tpu.memory_space<vmem>>, vector<1x4x16xf32>
    %437 = vector.shape_cast %436 : vector<1x4x16xf32> to vector<4x16xf32>
    %438 = arith.index_cast %c6_i32 : i32 to index
    %c0_127 = arith.constant 0 : index
    %c0_128 = arith.constant 0 : index
    %439 = vector.load %arg2[%438, %c0_127, %c0_128] : memref<8x4x16xf32, #tpu.memory_space<vmem>>, vector<1x4x16xf32>
    %440 = vector.shape_cast %439 : vector<1x4x16xf32> to vector<4x16xf32>
    %441 = arith.truncf %430 : vector<4x32xf32> to vector<4x32xbf16>
    %cst_129 = arith.constant dense<0.000000e+00> : vector<4x16xf32>
    %442 = tpu.matmul %441, %0, %cst_129 {dimension_numbers = #tpu.dot_dimension_numbers<[1], [0], [0], [1], [0, 0, 1, 1], [], []>} : vector<4x32xbf16>, vector<32x16xbf16>, vector<4x16xf32> -> vector<4x16xf32>
    %443 = arith.addf %440, %442 : vector<4x16xf32>
    %cst_130 = arith.constant dense<0xFF800000> : vector<4xf32>
    %444 = vector.multi_reduction <maximumf>, %443, %cst_130 [1] : vector<4x16xf32> to vector<4xf32>
    %445 = vector.shape_cast %444 : vector<4xf32> to vector<4x1xf32>
    %446 = vector.broadcast %445 : vector<4x1xf32> to vector<4x16xf32>
    %447 = arith.subf %443, %446 : vector<4x16xf32>
    %448 = math.exp %447 : vector<4x16xf32>
    %cst_131 = arith.constant dense<0.000000e+00> : vector<4xf32>
    %449 = vector.multi_reduction <add>, %448, %cst_131 [1] : vector<4x16xf32> to vector<4xf32>
    %450 = vector.shape_cast %449 : vector<4xf32> to vector<4x1xf32>
    %451 = tpu.reciprocal %450 {approx = true} : vector<4x1xf32> -> vector<4x1xf32>
    %452 = vector.broadcast %cst_29 : f32 to vector<4x1xf32>
    %453 = arith.mulf %451, %452 : vector<4x1xf32>
    %454 = vector.broadcast %453 : vector<4x1xf32> to vector<4x16xf32>
    %455 = arith.mulf %448, %454 : vector<4x16xf32>
    %456 = arith.mulf %437, %455 : vector<4x16xf32>
    %457 = arith.truncf %456 : vector<4x16xf32> to vector<4x16xbf16>
    %cst_132 = arith.constant dense<0.000000e+00> : vector<4x128xf32>
    %458 = tpu.matmul %457, %1, %cst_132 {dimension_numbers = #tpu.dot_dimension_numbers<[1], [0], [0], [1], [0, 0, 1, 1], [], []>} : vector<4x16xbf16>, vector<16x128xbf16>, vector<4x128xf32> -> vector<4x128xf32>
    %459 = arith.truncf %406 : vector<4x32xf32> to vector<4x32xbf16>
    %cst_133 = arith.constant dense<0.000000e+00> : vector<4x128xf32>
    %460 = tpu.matmul %459, %2, %cst_133 {dimension_numbers = #tpu.dot_dimension_numbers<[1], [0], [0], [1], [0, 0, 1, 1], [], []>} : vector<4x32xbf16>, vector<32x128xbf16>, vector<4x128xf32> -> vector<4x128xf32>
    %461 = arith.addf %458, %460 : vector<4x128xf32>
    %462 = arith.addf %461, %7 : vector<4x128xf32>
    %463 = arith.negf %462 : vector<4x128xf32>
    %464 = math.exp %463 : vector<4x128xf32>
    %cst_134 = arith.constant 1.000000e+00 : f32
    %465 = vector.broadcast %cst_134 : f32 to vector<4x128xf32>
    %466 = arith.addf %465, %464 : vector<4x128xf32>
    %467 = arith.divf %465, %466 : vector<4x128xf32>
    %468 = vector.extract_strided_slice %467 {offsets = [0, 0], sizes = [4, 32], strides = [1, 1]} : vector<4x128xf32> to vector<4x32xf32>
    %469 = vector.extract_strided_slice %467 {offsets = [0, 32], sizes = [4, 32], strides = [1, 1]} : vector<4x128xf32> to vector<4x32xf32>
    %470 = vector.extract_strided_slice %467 {offsets = [0, 64], sizes = [4, 32], strides = [1, 1]} : vector<4x128xf32> to vector<4x32xf32>
    %cst_135 = arith.constant 2.000000e+00 : f32
    %471 = vector.broadcast %cst_135 : f32 to vector<4x32xf32>
    %472 = arith.mulf %471, %470 : vector<4x32xf32>
    %cst_136 = arith.constant 1.000000e+00 : f32
    %473 = vector.broadcast %cst_136 : f32 to vector<4x32xf32>
    %474 = arith.subf %472, %473 : vector<4x32xf32>
    %475 = vector.extract_strided_slice %467 {offsets = [0, 96], sizes = [4, 32], strides = [1, 1]} : vector<4x128xf32> to vector<4x32xf32>
    %476 = arith.mulf %469, %404 : vector<4x32xf32>
    %477 = arith.mulf %468, %474 : vector<4x32xf32>
    %478 = arith.addf %476, %477 : vector<4x32xf32>
    %479 = math.tanh %478 : vector<4x32xf32>
    %480 = arith.mulf %475, %479 : vector<4x32xf32>
    %481 = arith.truncf %480 : vector<4x32xf32> to vector<4x32xbf16>
    %cst_137 = arith.constant dense<0.000000e+00> : vector<4x128xf32>
    %482 = tpu.matmul %481, %3, %cst_137 {dimension_numbers = #tpu.dot_dimension_numbers<[1], [0], [0], [1], [0, 0, 1, 1], [], []>} : vector<4x32xbf16>, vector<32x128xbf16>, vector<4x128xf32> -> vector<4x128xf32>
    %483 = arith.truncf %430 : vector<4x32xf32> to vector<4x32xbf16>
    %cst_138 = arith.constant dense<0.000000e+00> : vector<4x128xf32>
    %484 = tpu.matmul %483, %4, %cst_138 {dimension_numbers = #tpu.dot_dimension_numbers<[1], [0], [0], [1], [0, 0, 1, 1], [], []>} : vector<4x32xbf16>, vector<32x128xbf16>, vector<4x128xf32> -> vector<4x128xf32>
    %485 = arith.addf %482, %484 : vector<4x128xf32>
    %486 = arith.addf %485, %10 : vector<4x128xf32>
    %487 = arith.negf %486 : vector<4x128xf32>
    %488 = math.exp %487 : vector<4x128xf32>
    %cst_139 = arith.constant 1.000000e+00 : f32
    %489 = vector.broadcast %cst_139 : f32 to vector<4x128xf32>
    %490 = arith.addf %489, %488 : vector<4x128xf32>
    %491 = arith.divf %489, %490 : vector<4x128xf32>
    %492 = vector.extract_strided_slice %491 {offsets = [0, 0], sizes = [4, 32], strides = [1, 1]} : vector<4x128xf32> to vector<4x32xf32>
    %493 = vector.extract_strided_slice %491 {offsets = [0, 32], sizes = [4, 32], strides = [1, 1]} : vector<4x128xf32> to vector<4x32xf32>
    %494 = vector.extract_strided_slice %491 {offsets = [0, 64], sizes = [4, 32], strides = [1, 1]} : vector<4x128xf32> to vector<4x32xf32>
    %cst_140 = arith.constant 2.000000e+00 : f32
    %495 = vector.broadcast %cst_140 : f32 to vector<4x32xf32>
    %496 = arith.mulf %495, %494 : vector<4x32xf32>
    %cst_141 = arith.constant 1.000000e+00 : f32
    %497 = vector.broadcast %cst_141 : f32 to vector<4x32xf32>
    %498 = arith.subf %496, %497 : vector<4x32xf32>
    %499 = vector.extract_strided_slice %491 {offsets = [0, 96], sizes = [4, 32], strides = [1, 1]} : vector<4x128xf32> to vector<4x32xf32>
    %500 = arith.mulf %493, %428 : vector<4x32xf32>
    %501 = arith.mulf %492, %498 : vector<4x32xf32>
    %502 = arith.addf %500, %501 : vector<4x32xf32>
    %503 = math.tanh %502 : vector<4x32xf32>
    %504 = arith.mulf %499, %503 : vector<4x32xf32>
    %505 = arith.index_cast %c6_i32 : i32 to index
    %c0_142 = arith.constant 0 : index
    %c0_143 = arith.constant 0 : index
    %506 = vector.load %arg10[%505, %c0_142, %c0_143] : memref<8x4x32xf32, #tpu.memory_space<vmem>>, vector<1x4x32xf32>
    %507 = vector.shape_cast %506 : vector<1x4x32xf32> to vector<4x32xf32>
    %508 = vector.shape_cast %504 : vector<4x32xf32> to vector<1x4x32xf32>
    tpu.vector_store %arg10[%505, %c0_142, %c0_143], %508 {strides = array<i32>} : memref<8x4x32xf32, #tpu.memory_space<vmem>>, vector<1x4x32xf32>,
    %c7_i32 = arith.constant 7 : i32
    %509 = arith.index_cast %c7_i32 : i32 to index
    %c0_144 = arith.constant 0 : index
    %c0_145 = arith.constant 0 : index
    %510 = vector.load %arg1[%509, %c0_144, %c0_145] : memref<8x4x16xf32, #tpu.memory_space<vmem>>, vector<1x4x16xf32>
    %511 = vector.shape_cast %510 : vector<1x4x16xf32> to vector<4x16xf32>
    %512 = arith.index_cast %c7_i32 : i32 to index
    %c0_146 = arith.constant 0 : index
    %c0_147 = arith.constant 0 : index
    %513 = vector.load %arg2[%512, %c0_146, %c0_147] : memref<8x4x16xf32, #tpu.memory_space<vmem>>, vector<1x4x16xf32>
    %514 = vector.shape_cast %513 : vector<1x4x16xf32> to vector<4x16xf32>
    %515 = arith.truncf %504 : vector<4x32xf32> to vector<4x32xbf16>
    %cst_148 = arith.constant dense<0.000000e+00> : vector<4x16xf32>
    %516 = tpu.matmul %515, %0, %cst_148 {dimension_numbers = #tpu.dot_dimension_numbers<[1], [0], [0], [1], [0, 0, 1, 1], [], []>} : vector<4x32xbf16>, vector<32x16xbf16>, vector<4x16xf32> -> vector<4x16xf32>
    %517 = arith.addf %514, %516 : vector<4x16xf32>
    %cst_149 = arith.constant dense<0xFF800000> : vector<4xf32>
    %518 = vector.multi_reduction <maximumf>, %517, %cst_149 [1] : vector<4x16xf32> to vector<4xf32>
    %519 = vector.shape_cast %518 : vector<4xf32> to vector<4x1xf32>
    %520 = vector.broadcast %519 : vector<4x1xf32> to vector<4x16xf32>
    %521 = arith.subf %517, %520 : vector<4x16xf32>
    %522 = math.exp %521 : vector<4x16xf32>
    %cst_150 = arith.constant dense<0.000000e+00> : vector<4xf32>
    %523 = vector.multi_reduction <add>, %522, %cst_150 [1] : vector<4x16xf32> to vector<4xf32>
    %524 = vector.shape_cast %523 : vector<4xf32> to vector<4x1xf32>
    %525 = tpu.reciprocal %524 {approx = true} : vector<4x1xf32> -> vector<4x1xf32>
    %526 = vector.broadcast %cst_29 : f32 to vector<4x1xf32>
    %527 = arith.mulf %525, %526 : vector<4x1xf32>
    %528 = vector.broadcast %527 : vector<4x1xf32> to vector<4x16xf32>
    %529 = arith.mulf %522, %528 : vector<4x16xf32>
    %530 = arith.mulf %511, %529 : vector<4x16xf32>
    %531 = arith.truncf %530 : vector<4x16xf32> to vector<4x16xbf16>
    %cst_151 = arith.constant dense<0.000000e+00> : vector<4x128xf32>
    %532 = tpu.matmul %531, %1, %cst_151 {dimension_numbers = #tpu.dot_dimension_numbers<[1], [0], [0], [1], [0, 0, 1, 1], [], []>} : vector<4x16xbf16>, vector<16x128xbf16>, vector<4x128xf32> -> vector<4x128xf32>
    %533 = arith.truncf %480 : vector<4x32xf32> to vector<4x32xbf16>
    %cst_152 = arith.constant dense<0.000000e+00> : vector<4x128xf32>
    %534 = tpu.matmul %533, %2, %cst_152 {dimension_numbers = #tpu.dot_dimension_numbers<[1], [0], [0], [1], [0, 0, 1, 1], [], []>} : vector<4x32xbf16>, vector<32x128xbf16>, vector<4x128xf32> -> vector<4x128xf32>
    %535 = arith.addf %532, %534 : vector<4x128xf32>
    %536 = arith.addf %535, %7 : vector<4x128xf32>
    %537 = arith.negf %536 : vector<4x128xf32>
    %538 = math.exp %537 : vector<4x128xf32>
    %cst_153 = arith.constant 1.000000e+00 : f32
    %539 = vector.broadcast %cst_153 : f32 to vector<4x128xf32>
    %540 = arith.addf %539, %538 : vector<4x128xf32>
    %541 = arith.divf %539, %540 : vector<4x128xf32>
    %542 = vector.extract_strided_slice %541 {offsets = [0, 0], sizes = [4, 32], strides = [1, 1]} : vector<4x128xf32> to vector<4x32xf32>
    %543 = vector.extract_strided_slice %541 {offsets = [0, 32], sizes = [4, 32], strides = [1, 1]} : vector<4x128xf32> to vector<4x32xf32>
    %544 = vector.extract_strided_slice %541 {offsets = [0, 64], sizes = [4, 32], strides = [1, 1]} : vector<4x128xf32> to vector<4x32xf32>
    %cst_154 = arith.constant 2.000000e+00 : f32
    %545 = vector.broadcast %cst_154 : f32 to vector<4x32xf32>
    %546 = arith.mulf %545, %544 : vector<4x32xf32>
    %cst_155 = arith.constant 1.000000e+00 : f32
    %547 = vector.broadcast %cst_155 : f32 to vector<4x32xf32>
    %548 = arith.subf %546, %547 : vector<4x32xf32>
    %549 = vector.extract_strided_slice %541 {offsets = [0, 96], sizes = [4, 32], strides = [1, 1]} : vector<4x128xf32> to vector<4x32xf32>
    %550 = arith.mulf %543, %478 : vector<4x32xf32>
    %551 = arith.mulf %542, %548 : vector<4x32xf32>
    %552 = arith.addf %550, %551 : vector<4x32xf32>
    %553 = math.tanh %552 : vector<4x32xf32>
    %554 = arith.mulf %549, %553 : vector<4x32xf32>
    %555 = arith.truncf %554 : vector<4x32xf32> to vector<4x32xbf16>
    %cst_156 = arith.constant dense<0.000000e+00> : vector<4x128xf32>
    %556 = tpu.matmul %555, %3, %cst_156 {dimension_numbers = #tpu.dot_dimension_numbers<[1], [0], [0], [1], [0, 0, 1, 1], [], []>} : vector<4x32xbf16>, vector<32x128xbf16>, vector<4x128xf32> -> vector<4x128xf32>
    %557 = arith.truncf %504 : vector<4x32xf32> to vector<4x32xbf16>
    %cst_157 = arith.constant dense<0.000000e+00> : vector<4x128xf32>
    %558 = tpu.matmul %557, %4, %cst_157 {dimension_numbers = #tpu.dot_dimension_numbers<[1], [0], [0], [1], [0, 0, 1, 1], [], []>} : vector<4x32xbf16>, vector<32x128xbf16>, vector<4x128xf32> -> vector<4x128xf32>
    %559 = arith.addf %556, %558 : vector<4x128xf32>
    %560 = arith.addf %559, %10 : vector<4x128xf32>
    %561 = arith.negf %560 : vector<4x128xf32>
    %562 = math.exp %561 : vector<4x128xf32>
    %cst_158 = arith.constant 1.000000e+00 : f32
    %563 = vector.broadcast %cst_158 : f32 to vector<4x128xf32>
    %564 = arith.addf %563, %562 : vector<4x128xf32>
    %565 = arith.divf %563, %564 : vector<4x128xf32>
    %566 = vector.extract_strided_slice %565 {offsets = [0, 0], sizes = [4, 32], strides = [1, 1]} : vector<4x128xf32> to vector<4x32xf32>
    %567 = vector.extract_strided_slice %565 {offsets = [0, 32], sizes = [4, 32], strides = [1, 1]} : vector<4x128xf32> to vector<4x32xf32>
    %568 = vector.extract_strided_slice %565 {offsets = [0, 64], sizes = [4, 32], strides = [1, 1]} : vector<4x128xf32> to vector<4x32xf32>
    %cst_159 = arith.constant 2.000000e+00 : f32
    %569 = vector.broadcast %cst_159 : f32 to vector<4x32xf32>
    %570 = arith.mulf %569, %568 : vector<4x32xf32>
    %cst_160 = arith.constant 1.000000e+00 : f32
    %571 = vector.broadcast %cst_160 : f32 to vector<4x32xf32>
    %572 = arith.subf %570, %571 : vector<4x32xf32>
    %573 = vector.extract_strided_slice %565 {offsets = [0, 96], sizes = [4, 32], strides = [1, 1]} : vector<4x128xf32> to vector<4x32xf32>
    %574 = arith.mulf %567, %502 : vector<4x32xf32>
    %575 = arith.mulf %566, %572 : vector<4x32xf32>
    %576 = arith.addf %574, %575 : vector<4x32xf32>
    %577 = math.tanh %576 : vector<4x32xf32>
    %578 = arith.mulf %573, %577 : vector<4x32xf32>
    %579 = arith.index_cast %c7_i32 : i32 to index
    %c0_161 = arith.constant 0 : index
    %c0_162 = arith.constant 0 : index
    %580 = vector.load %arg10[%579, %c0_161, %c0_162] : memref<8x4x32xf32, #tpu.memory_space<vmem>>, vector<1x4x32xf32>
    %581 = vector.shape_cast %580 : vector<1x4x32xf32> to vector<4x32xf32>
    %582 = vector.shape_cast %578 : vector<4x32xf32> to vector<1x4x32xf32>
    tpu.vector_store %arg10[%579, %c0_161, %c0_162], %582 {strides = array<i32>} : memref<8x4x32xf32, #tpu.memory_space<vmem>>, vector<1x4x32xf32>,
    %c7_i32_163 = arith.constant 7 : i32
    %c0_164 = arith.constant 0 : index
    %c0_165 = arith.constant 0 : index
    %c0_166 = arith.constant 0 : index
    %583 = vector.load %arg11[%c0_164, %c0_165, %c0_166] : memref<2x4x32xf32, #tpu.memory_space<vmem>>, vector<1x4x32xf32>
    %584 = vector.shape_cast %583 : vector<1x4x32xf32> to vector<4x32xf32>
    %585 = vector.shape_cast %554 : vector<4x32xf32> to vector<1x4x32xf32>
    tpu.vector_store %arg11[%c0_164, %c0_165, %c0_166], %585 {strides = array<i32>} : memref<2x4x32xf32, #tpu.memory_space<vmem>>, vector<1x4x32xf32>,
    %c1 = arith.constant 1 : index
    %c0_167 = arith.constant 0 : index
    %c0_168 = arith.constant 0 : index
    %586 = vector.load %arg11[%c1, %c0_167, %c0_168] : memref<2x4x32xf32, #tpu.memory_space<vmem>>, vector<1x4x32xf32>
    %587 = vector.shape_cast %586 : vector<1x4x32xf32> to vector<4x32xf32>
    %588 = vector.shape_cast %578 : vector<4x32xf32> to vector<1x4x32xf32>
    tpu.vector_store %arg11[%c1, %c0_167, %c0_168], %588 {strides = array<i32>} : memref<2x4x32xf32, #tpu.memory_space<vmem>>, vector<1x4x32xf32>,
    %c0_169 = arith.constant 0 : index
    %c0_170 = arith.constant 0 : index
    %c0_171 = arith.constant 0 : index
    %589 = vector.load %arg12[%c0_169, %c0_170, %c0_171] : memref<2x4x32xf32, #tpu.memory_space<vmem>>, vector<1x4x32xf32>
    %590 = vector.shape_cast %589 : vector<1x4x32xf32> to vector<4x32xf32>
    %591 = vector.shape_cast %552 : vector<4x32xf32> to vector<1x4x32xf32>
    tpu.vector_store %arg12[%c0_169, %c0_170, %c0_171], %591 {strides = array<i32>} : memref<2x4x32xf32, #tpu.memory_space<vmem>>, vector<1x4x32xf32>,
    %c1_172 = arith.constant 1 : index
    %c0_173 = arith.constant 0 : index
    %c0_174 = arith.constant 0 : index
    %592 = vector.load %arg12[%c1_172, %c0_173, %c0_174] : memref<2x4x32xf32, #tpu.memory_space<vmem>>, vector<1x4x32xf32>
    %593 = vector.shape_cast %592 : vector<1x4x32xf32> to vector<4x32xf32>
    %594 = vector.shape_cast %576 : vector<4x32xf32> to vector<1x4x32xf32>
    tpu.vector_store %arg12[%c1_172, %c0_173, %c0_174], %594 {strides = array<i32>} : memref<2x4x32xf32, #tpu.memory_space<vmem>>, vector<1x4x32xf32>,
    return
  }
  func.func @transform_0(%arg0: i32) -> (i32, i32, i32) {
    %c0_i32 = arith.constant 0 : i32
    %c0_i32_0 = arith.constant 0 : i32
    %c0_i32_1 = arith.constant 0 : i32
    %c0_i32_2 = arith.constant 0 : i32
    return %c0_i32, %c0_i32_0, %c0_i32_1 : i32, i32, i32
  }
  func.func @transform_1(%arg0: i32) -> (i32, i32, i32) {
    %c0_i32 = arith.constant 0 : i32
    %c0_i32_0 = arith.constant 0 : i32
    %c0_i32_1 = arith.constant 0 : i32
    %c0_i32_2 = arith.constant 0 : i32
    return %c0_i32, %c0_i32_0, %c0_i32_1 : i32, i32, i32
  }
  func.func @transform_2(%arg0: i32) -> (i32, i32) {
    %c0_i32 = arith.constant 0 : i32
    %c0_i32_0 = arith.constant 0 : i32
    %c0_i32_1 = arith.constant 0 : i32
    return %c0_i32, %c0_i32_0 : i32, i32
  }
  func.func @transform_3(%arg0: i32) -> (i32, i32) {
    %c0_i32 = arith.constant 0 : i32
    %c0_i32_0 = arith.constant 0 : i32
    %c0_i32_1 = arith.constant 0 : i32
    return %c0_i32, %c0_i32_0 : i32, i32
  }
  func.func @transform_4(%arg0: i32) -> (i32, i32) {
    %c0_i32 = arith.constant 0 : i32
    %c0_i32_0 = arith.constant 0 : i32
    %c0_i32_1 = arith.constant 0 : i32
    return %c0_i32, %c0_i32_0 : i32, i32
  }
  func.func @transform_5(%arg0: i32) -> (i32, i32) {
    %c0_i32 = arith.constant 0 : i32
    %c0_i32_0 = arith.constant 0 : i32
    %c0_i32_1 = arith.constant 0 : i32
    return %c0_i32, %c0_i32_0 : i32, i32
  }
  func.func @transform_6(%arg0: i32) -> (i32, i32) {
    %c0_i32 = arith.constant 0 : i32
    %c0_i32_0 = arith.constant 0 : i32
    %c0_i32_1 = arith.constant 0 : i32
    return %c0_i32, %c0_i32_0 : i32, i32
  }
  func.func @transform_7(%arg0: i32) -> (i32, i32) {
    %c0_i32 = arith.constant 0 : i32
    %c0_i32_0 = arith.constant 0 : i32
    %c0_i32_1 = arith.constant 0 : i32
    return %c0_i32, %c0_i32_0 : i32, i32
  }
  func.func @transform_8(%arg0: i32) -> (i32, i32) {
    %c0_i32 = arith.constant 0 : i32
    %c0_i32_0 = arith.constant 0 : i32
    %c0_i32_1 = arith.constant 0 : i32
    return %c0_i32, %c0_i32_0 : i32, i32
  }
  func.func @transform_9(%arg0: i32) -> (i32, i32, i32) {
    %c0_i32 = arith.constant 0 : i32
    %c0_i32_0 = arith.constant 0 : i32
    %c0_i32_1 = arith.constant 0 : i32
    %c0_i32_2 = arith.constant 0 : i32
    return %c0_i32, %c0_i32_0, %c0_i32_1 : i32, i32, i32
  }
  func.func @transform_10(%arg0: i32) -> (i32, i32, i32) {
    %c0_i32 = arith.constant 0 : i32
    %c0_i32_0 = arith.constant 0 : i32
    %c0_i32_1 = arith.constant 0 : i32
    %c0_i32_2 = arith.constant 0 : i32
    return %c0_i32, %c0_i32_0, %c0_i32_1 : i32, i32, i32
  }
  func.func @transform_11(%arg0: i32) -> (i32, i32, i32) {
    %c0_i32 = arith.constant 0 : i32
    %c0_i32_0 = arith.constant 0 : i32
    %c0_i32_1 = arith.constant 0 : i32
    %c0_i32_2 = arith.constant 0 : i32
    return %c0_i32, %c0_i32_0, %c0_i32_1 : i32, i32, i32
  }
}

</mosaic_0001>

<bundles_post_ra>
// kernel: encoder_forward.1
= control target key start
LH: loop header
LB: loop body
LE: loop exit
PB: predicated region body
PF: predicated region fallthrough
CT: control target
= control target key end

     0   :  { %17 = vsyncpa [#allocation3], 0  ;;  %vm101_vm0 = vcmask 130048   ;;  %s2561_s0 = inlined_call_operand.vmem [shape: f32[8,4,16], index: 0, kind: input, shape index: {}]   ;;  %s2562_s1 = inlined_call_operand.vmem [shape: f32[8,4,16], index: 1, kind: input, shape index: {}]   ;;  %s2563_s2 = inlined_call_operand.vmem [shape: bf16[32,16], index: 2, kind: input, shape index: {}]   ;;  %s2564_s3 = inlined_call_operand.vmem [shape: bf16[16,128], index: 3, kind: input, shape index: {}]   ;;  %s2565_s4 = inlined_call_operand.vmem [shape: bf16[32,128], index: 4, kind: input, shape index: {}]   ;;  %s2566_s5 = inlined_call_operand.vmem [shape: f32[1,128], index: 5, kind: input, shape index: {}]   ;;  %s2567_s6 = inlined_call_operand.vmem [shape: bf16[32,128], index: 6, kind: input, shape index: {}]   ;;  %s2568_s7 = inlined_call_operand.vmem [shape: bf16[32,128], index: 7, kind: input, shape index: {}]   ;;  %s2569_s8 = inlined_call_operand.vmem [shape: f32[1,128], index: 8, kind: input, shape index: {}]   ;;  %s2570_s9 = inlined_call_operand.hbm [shape: f32[8,4,32], index: 9, kind: output, shape index: {0}]   ;;  %s2571_s10 = inlined_call_operand.hbm [shape: f32[2,4,32], index: 10, kind: output, shape index: {1}]   ;;  %s2572_s11 = inlined_call_operand.hbm [shape: f32[2,4,32], index: 11, kind: output, shape index: {2}]  }
   0x1   :  { %v2058_v0 = vld [vmem:[%s2565_s4 + $0x8] sm:$0xff]  ;;  %v2063_v1 = vld [vmem:[%s2564_s3] sm:$0xff] }
   0x2   :  { %v64_v2 = vld [vmem:[%s2561_s0] sm:$0xf]  ;;  %88 = vmatpush.bf16.msra.mxu0 %v2058_v0  ;;  %112 = vmatpush.bf16.msra.mxu1 %v2063_v1 }
   0x3   :  { %v65_v3 = vpack.c.bf16 %v64_v2, %v64_v2  ;;  %v2073_v4 = vld [vmem:[%s2565_s4] sm:$0xff] }
   0x4   :  { %18 = vsyncpa [#allocation5], 0  ;;  %v1987_v5 = vmov 0   ;;  %v2082_v7 = vld [vmem:[%s2566_s5] ss:$0 sm:$0xff]  ;;  %s1988_s27 = smov 64  }
   0x5   :  { %1650 = vmatmul.msk.bf16.vlgmr.msra.gmra.mxu1 %vm101_vm0, %v65_v3  ;;  %s1989_s28 = smov 32   ;;  %v2094_v34 = vld [vmem:[%s2568_s7 + $0x8] sm:$0xff]  ;;  %v2105_v36 = vld [vmem:[%s2568_s7] sm:$0xff]  ;;  %vm78_vm5 = vcmask 261120   ;;  %vm296_vm10 = vcmask 125952   ;;  %s1991_s14 = smov [#allocation2]  }
   0x6   :  { %89 = vmatpush.bf16.msra.mxu0 %v2073_v4  ;;  %v2099_v35 = vld [vmem:[%s2567_s6 + $0x8] sm:$0xff]  ;;  %176 = vmatpush.bf16.msra.mxu2 %v2094_v34  ;;  %v2111_v37 = vld [vmem:[%s2567_s6] sm:$0xff]  ;;  %s1589_s15 = sshll.u32 %s1991_s14, 4  ;;  %s1992_s17 = smov [#allocation4]   ;;  %s1590_s15 = int_to_ptr.vmem [resolvable:$true] %s1589_s15 }
   0x7   :  { %207 = vmatpush.bf16.msra.mxu3 %v2099_v35  ;;  %v2129_v45 = vld [vmem:[%s2569_s8] ss:$0 sm:$0xff]  ;;  %s1602_s18 = sshll.u32 %s1992_s17, 4  ;;  %s1604_s20 = sshll.u32 %s2571_s10, 4  ;;  %s1603_s18 = int_to_ptr.vmem [resolvable:$true] %s1602_s18  ;;  %s1605_s20 = int_to_ptr.hbm [resolvable:$true] %s1604_s20 }
   0x8   :  { %s1993_s21 = smov 4  }
   0x9   :  { %90 = vmatmul.bf16.vlgmr.msra.gmra.mxu0 %v1987_v5 }
   0xa   :  { %317 = vmatpush.bf16.msrb.mxu0 %v2058_v0  ;;  %177 = vmatpush.bf16.msra.mxu2 %v2105_v36 }
   0xb   :  { %208 = vmatpush.bf16.msra.mxu3 %v2111_v37 }
   0xd   :  { %178 = vmatmul.bf16.vlgmr.msra.gmra.mxu2 %v1987_v5 }
   0xe   :  { %318 = vmatpush.bf16.msrb.mxu0 %v2073_v4  ;;  %334 = vmatpush.bf16.msrb.mxu2 %v2063_v1 }
   0xf   :  { %386 = vmatpush.bf16.msrb.mxu3 %v2094_v34 }
  0x12   :  { %502 = vmatpush.bf16.msra.mxu2 %v2058_v0 }
  0x13   :  { %387 = vmatpush.bf16.msrb.mxu3 %v2105_v36 }
  0x16   :  { %503 = vmatpush.bf16.msra.mxu2 %v2073_v4 }
  0x82   :  { %v114_v6 = vpop.f32.mrf.mxu1 }
  0x86   :  { %v91_v8 = vpop.f32.mrf.mxu0 }
  0x87   :  { %v115_v9 = vadd.f32 %v114_v6, %v91_v8 }
  0x89   :  { %v118_v10 = vadd.f32 %v2082_v7, %v115_v9 }
  0x8a   :  { %v116_v11 = vpop.f32.mrf.mxu1 }
  0x8b   :  { %v1651_v12 = vmul.f32 -1.442695, %v118_v10 }
  0x8d   :  { %1776 = vpow2.f32 %v1651_v12  ;;  %v2141_v12 = vld [vmem:[%s2563_s2 + $0x8] sm:$0xff] }
  0x8e   :  { %v93_v13 = vpop.f32.mrf.mxu0  ;;  %288 = vmatpush.bf16.msrb.mxu1 %v2141_v12  ;;  %474 = vmatpush.bf16.msra.mxu0 %v2141_v12 }
  0x8f   :  { %v2147_v13 = vld [vmem:[%s2563_s2] sm:$0xff] }
  0x90   :  { %v179_v41 = vpop.f32.mrf.mxu2 }
  0x92   :  { %289 = vmatpush.bf16.msrb.mxu1 %v2147_v13  ;;  %475 = vmatpush.bf16.msra.mxu0 %v2147_v13 }
  0x93   :  { %v1777_v14 = vpop.eup %1776 }
  0x94   :  { %v122_v15 = vadd.f32 1.0, %v1777_v14 }
  0x96   :  { %1778 = vrcp.f32 %v122_v15  ;;  %v134_v19 = vand.u32 2147483648, %v122_v15  ;;  %v132_v21 = vand.u32 2147483647, %v122_v15  ;;  %vm128_vm2 = vweird.f32 %v122_v15  ;;  %405 = vmatpush.bf16.msra.mxu1 %v2099_v35 }
  0x98   :  { %v135_v23 = vor.u32 1.1754944e-38, %v134_v19  ;;  %vm133_vm4 = vcmp.eq.f32.partialorder %v132_v21, 8.507059e+37  ;;  %v181_v43 = vpop.f32.mrf.mxu2 }
  0x9a   :  { %406 = vmatpush.bf16.msra.mxu1 %v2111_v37 }
  0x9c   :  { %v1779_v16 = vpop.eup %1778 }
  0x9d   :  { %v124_v17 = vmul.f32 %v1779_v16, %v122_v15  ;;  %vm129_vm1 = vweird.f32 %v1779_v16 }
  0x9e   :  { %vm130_vm3 = vmor %vm128_vm2, %vm129_vm1 }
  0x9f   :  { %v125_v18 = vsub.f32 1.0, %v124_v17 }
  0xa1   :  { %v126_v20 = vmul.f32 %v1779_v16, %v125_v18  ;;  %v1673_v18 = vld [vmem:[%s2562_s1 + $0x4] sm:$0xf] }
  0xa3   :  { %v127_v22 = vadd.f32 %v1779_v16, %v126_v20 }
  0xa5   :  { %v131_v24 = vsel %vm130_vm3, %v1779_v16, %v127_v22 }
  0xa6   :  { %v136_v25 = vsel %vm133_vm4, %v135_v23, %v131_v24 }
  0xa7   :  { %v138_v26 = vmul.f32 2.0, %v136_v25  ;;  %v140_v30 = vmul.f32 0.0, %v136_v25 }
  0xa9   :  { %v1652_v27 = vadd.f32 -1.0, %v138_v26 }
  0xab   :  { %142 = vrot.lane.b32.xlu0 %v1652_v27, %s1988_s27 }
 0x11d   :  { %v143_v28 = vpop.permute.xlu0 %142 }
 0x11e   :  { %v145_v29 = vmul.f32 %v143_v28, %v136_v25 }
 0x120   :  { %147 = vrot.lane.b32.xlu0 %v145_v29, %s1989_s28 }
 0x192   :  { %v148_v31 = vpop.permute.xlu0 %147 }
 0x193   :  { %v2087_v32 = vadd.f32 %v148_v31, %v140_v30 }
 0x195   :  { %1780 = vtanh.f32 %v2087_v32 }
 0x19b   :  { %v1781_v33 = vpop.eup %1780 }
 0x19c   :  { %153 = vrot.lane.b32.xlu1 %v1781_v33, %s1988_s27 }
 0x20e   :  { %v154_v38 = vpop.permute.xlu1 %153 }
 0x20f   :  { %v156_v39 = vmul.f32 %v154_v38, %v136_v25  ;;  %v1672_v38 = vld [vmem:[%s2561_s0 + $0x4] sm:$0xf] }
 0x211   :  { %v157_v40 = vpack.c.bf16 %v156_v39, %v156_v39 }
 0x213   :  { %184 = vrot.lane.b32.xlu1 %v157_v40, %s1989_s28 }
 0x285   :  { %v185_v42 = vpop.permute.xlu1 %184 }
 0x286   :  { %1669 = vmatmul.msk.bf16.vlgmr.msra.gmra.mxu3 %vm78_vm5, %v185_v42  ;;  %1683 = vmatmul.msk.bf16.vlgmr.msrb.gmra.mxu0 %vm78_vm5, %v185_v42 }
 0x287   :  { %519 = vmatpush.bf16.msra.mxu3 %v2063_v1  ;;  %590 = vmatpush.bf16.msrb.mxu0 %v2099_v35 }
 0x28b   :  { %591 = vmatpush.bf16.msrb.mxu0 %v2111_v37 }
 0x303   :  { %v2124_v44 = vpop.f32.mrf.mxu0 }
 0x309   :  { %v210_v46 = vpop.f32.mrf.mxu3 }
 0x30a   :  { %v211_v47 = vadd.f32 %v210_v46, %v179_v41 }
 0x30b   :  { %v322_v48 = vpop.f32.mrf.mxu0 }
 0x30c   :  { %v214_v49 = vadd.f32 %v2129_v45, %v211_v47 }
 0x30e   :  { %v1670_v50 = vmul.f32 -1.442695, %v214_v49 }
 0x310   :  { %1782 = vpow2.f32 %v1670_v50 }
 0x311   :  { %v212_v51 = vpop.f32.mrf.mxu3 }
 0x316   :  { %v1783_v52 = vpop.eup %1782 }
 0x317   :  { %v218_v53 = vadd.f32 1.0, %v1783_v52 }
 0x319   :  { %1784 = vrcp.f32 %v218_v53  ;;  %v230_v57 = vand.u32 2147483648, %v218_v53  ;;  %v228_v59 = vand.u32 2147483647, %v218_v53  ;;  %vm224_vm7 = vweird.f32 %v218_v53 }
 0x31b   :  { %v231_v61 = vor.u32 1.1754944e-38, %v230_v57  ;;  %vm229_vm9 = vcmp.eq.f32.partialorder %v228_v59, 8.507059e+37 }
 0x31f   :  { %v1785_v54 = vpop.eup %1784 }
 0x320   :  { %v220_v55 = vmul.f32 %v1785_v54, %v218_v53  ;;  %vm225_vm6 = vweird.f32 %v1785_v54 }
 0x321   :  { %vm226_vm8 = vmor %vm224_vm7, %vm225_vm6 }
 0x322   :  { %v221_v56 = vsub.f32 1.0, %v220_v55 }
 0x324   :  { %v222_v58 = vmul.f32 %v1785_v54, %v221_v56 }
 0x326   :  { %v223_v60 = vadd.f32 %v1785_v54, %v222_v58 }
 0x328   :  { %v227_v62 = vsel %vm226_vm8, %v1785_v54, %v223_v60 }
 0x329   :  { %v232_v63 = vsel %vm229_vm9, %v231_v61, %v227_v62 }
 0x32a   :  { %v234_v2 = vmul.f32 2.0, %v232_v63  ;;  %v236_v8 = vmul.f32 0.0, %v232_v63 }
 0x32c   :  { %v1671_v3 = vadd.f32 -1.0, %v234_v2 }
 0x32e   :  { %238 = vrot.lane.b32.xlu2 %v1671_v3, %s1988_s27 }
 0x388   :  { %v239_v5 = vpop.permute.xlu2 %238 }
 0x389   :  { %v241_v6 = vmul.f32 %v239_v5, %v232_v63 }
 0x38b   :  { %243 = vrot.lane.b32.xlu2 %v241_v6, %s1989_s28 }
 0x3e5   :  { %v244_v9 = vpop.permute.xlu2 %243 }
 0x3e6   :  { %v2134_v10 = vadd.f32 %v244_v9, %v236_v8 }
 0x3e8   :  { %1786 = vtanh.f32 %v2134_v10 }
 0x3ee   :  { %v1787_v11 = vpop.eup %1786 }
 0x3ef   :  { %249 = vrot.lane.b32.xlu0 %v1787_v11, %s1988_s27 }
 0x461   :  { %v250_v14 = vpop.permute.xlu0 %249 }
 0x462   :  { %v2156_v15 = vmul.f32 %v250_v14, %v232_v63 }
 0x464   :  { %v263_v16 = vpack.c.bf16 %v2156_v15, %v2156_v15 }
 0x466   :  { %265 = vrot.lane.b32.xlu1 %v263_v16, %s1989_s28 }
 0x4d8   :  { %v266_v17 = vpop.permute.xlu1 %265 }
 0x4d9   :  { %1682 = vmatmul.msk.bf16.vlgmr.msrb.gmra.mxu1 %vm78_vm5, %v266_v17  ;;  %1687 = vmatmul.msk.bf16.vlgmr.msrb.gmra.mxu3 %vm78_vm5, %v266_v17 }
 0x4da   :  { %571 = vmatpush.bf16.msrb.mxu1 %v2094_v34  ;;  %687 = vmatpush.bf16.msrb.mxu3 %v2058_v0 }
 0x4de   :  { %572 = vmatpush.bf16.msrb.mxu1 %v2105_v36  ;;  %688 = vmatpush.bf16.msrb.mxu3 %v2073_v4 }
 0x556   :  { %v291_v19 = vpop.f32.mrf.mxu1 }
 0x557   :  { %v295_v20 = vadd.f32 %v1673_v18, %v291_v19 }
 0x559   :  { %v297_v21 = vsel %vm296_vm10, %v295_v20, -inf }
 0x55a   :  { %298 = vmax.xlane.f32.xlu2 %v297_v21 }
 0x55c   :  { %v2171_v22 = vpop.f32.mrf.mxu3 }
 0x55e   :  { %v293_v23 = vpop.f32.mrf.mxu1 }
 0x564   :  { %v391_v24 = vpop.f32.mrf.mxu3 }
 0x5cd   :  { %v299_v25 = vpop.xlane.xlu2 %298 }
 0x5ce   :  { %v300_v26 = vsub.f32 %v295_v20, %v299_v25 }
 0x5d0   :  { %v301_v27 = vmul.f32 1.442695, %v300_v26 }
 0x5d2   :  { %1788 = vpow2.f32 %v301_v27 }
 0x5d8   :  { %v1789_v28 = vpop.eup %1788 }
 0x5d9   :  { %v303_v29 = vsel %vm296_vm10, %v1789_v28, 0.0 }
 0x5da   :  { %304 = vadd.xlane.f32.xlu0 %v303_v29 }
 0x64d   :  { %v305_v30 = vpop.xlane.xlu0 %304 }
 0x64e   :  { %1790 = vrcp.f32 %v305_v30 }
 0x654   :  { %v1791_v31 = vpop.eup %1790 }
 0x655   :  { %v307_v33 = vmul.f32 16.0, %v1791_v31 }
 0x657   :  { %v308_v39 = vmul.f32 %v1789_v28, %v307_v33 }
 0x659   :  { %v309_v40 = vmul.f32 %v1672_v38, %v308_v39 }
 0x65b   :  { %v310_v41 = vpack.c.bf16 %v309_v40, %v309_v40 }
 0x65d   :  { %1684 = vmatmul.msk.bf16.vlgmr.msrb.gmra.mxu2 %vm101_vm0, %v310_v41 }
 0x65e   :  { %659 = vmatpush.bf16.msrb.mxu2 %v2141_v12 }
 0x662   :  { %660 = vmatpush.bf16.msrb.mxu2 %v2147_v13 }
 0x6e0   :  { %v336_v42 = vpop.f32.mrf.mxu2 }
 0x6e1   :  { %v337_v43 = vadd.f32 %v336_v42, %v2124_v44 }
 0x6e3   :  { %v340_v46 = vadd.f32 %v2082_v7, %v337_v43 }
 0x6e5   :  { %v1685_v47 = vmul.f32 -1.442695, %v340_v46 }
 0x6e7   :  { %1792 = vpow2.f32 %v1685_v47 }
 0x6e8   :  { %v338_v48 = vpop.f32.mrf.mxu2 }
 0x6ed   :  { %v1793_v49 = vpop.eup %1792 }
 0x6ee   :  { %v344_v50 = vadd.f32 1.0, %v1793_v49 }
 0x6f0   :  { %1794 = vrcp.f32 %v344_v50  ;;  %v356_v54 = vand.u32 2147483648, %v344_v50  ;;  %v354_v56 = vand.u32 2147483647, %v344_v50  ;;  %vm350_vm12 = vweird.f32 %v344_v50 }
 0x6f2   :  { %v357_v58 = vor.u32 1.1754944e-38, %v356_v54  ;;  %vm355_vm14 = vcmp.eq.f32.partialorder %v354_v56, 8.507059e+37 }
 0x6f6   :  { %v1795_v51 = vpop.eup %1794 }
 0x6f7   :  { %v346_v52 = vmul.f32 %v1795_v51, %v344_v50  ;;  %vm351_vm11 = vweird.f32 %v1795_v51 }
 0x6f8   :  { %vm352_vm13 = vmor %vm350_vm12, %vm351_vm11 }
 0x6f9   :  { %v347_v53 = vsub.f32 1.0, %v346_v52 }
 0x6fb   :  { %v348_v55 = vmul.f32 %v1795_v51, %v347_v53 }
 0x6fd   :  { %v349_v57 = vadd.f32 %v1795_v51, %v348_v55 }
 0x6ff   :  { %v353_v44 = vsel %vm352_vm13, %v1795_v51, %v349_v57 }
 0x700   :  { %v358_v59 = vsel %vm355_vm14, %v357_v58, %v353_v44 }
 0x701   :  { %v360_v60 = vmul.f32 2.0, %v358_v59  ;;  %v362_v2 = vmul.f32 %v358_v59, %v2087_v32 }
 0x703   :  { %v1686_v61 = vadd.f32 -1.0, %v360_v60 }
 0x705   :  { %364 = vrot.lane.b32.xlu1 %v1686_v61, %s1988_s27 }
 0x777   :  { %v365_v62 = vpop.permute.xlu1 %364 }
 0x778   :  { %v367_v63 = vmul.f32 %v365_v62, %v358_v59 }
 0x77a   :  { %369 = vrot.lane.b32.xlu1 %v367_v63, %s1989_s28 }
 0x7ec   :  { %v370_v3 = vpop.permute.xlu1 %369 }
 0x7ed   :  { %v2185_v5 = vadd.f32 %v370_v3, %v362_v2 }
 0x7ef   :  { %1796 = vtanh.f32 %v2185_v5 }
 0x7f5   :  { %v1797_v6 = vpop.eup %1796 }
 0x7f6   :  { %375 = vrot.lane.b32.xlu1 %v1797_v6, %s1988_s27  ;;  %v1691_v6 = vld [vmem:[%s2561_s0 + $0x8] sm:$0xf] }
 0x868   :  { %v376_v8 = vpop.permute.xlu1 %375 }
 0x869   :  { %v378_v9 = vmul.f32 %v376_v8, %v358_v59 }
 0x86b   :  { %v379_v11 = vpack.c.bf16 %v378_v9, %v378_v9 }
 0x86d   :  { %394 = vrot.lane.b32.xlu1 %v379_v11, %s1989_s28 }
 0x8df   :  { %v395_v14 = vpop.permute.xlu1 %394 }
 0x8e0   :  { %1688 = vmatmul.msk.bf16.vlgmr.msra.gmra.mxu1 %vm78_vm5, %v395_v14  ;;  %1694 = vmatmul.msk.bf16.vlgmr.msra.gmra.mxu2 %vm78_vm5, %v395_v14 }
 0x8e1   :  { %704 = vmatpush.bf16.msra.mxu1 %v2063_v1  ;;  %775 = vmatpush.bf16.msra.mxu2 %v2099_v35 }
 0x8e5   :  { %776 = vmatpush.bf16.msra.mxu2 %v2111_v37 }
 0x95d   :  { %v408_v32 = vpop.f32.mrf.mxu1 }
 0x95e   :  { %v409_v16 = vadd.f32 %v408_v32, %v2171_v22 }
 0x960   :  { %v412_v17 = vadd.f32 %v2129_v45, %v409_v16 }
 0x962   :  { %v1689_v18 = vmul.f32 -1.442695, %v412_v17 }
 0x963   :  { %v2197_v19 = vpop.f32.mrf.mxu2 }
 0x964   :  { %1798 = vpow2.f32 %v1689_v18 }
 0x965   :  { %v410_v20 = vpop.f32.mrf.mxu1 }
 0x96a   :  { %v1799_v21 = vpop.eup %1798 }
 0x96b   :  { %v416_v23 = vadd.f32 1.0, %v1799_v21  ;;  %v507_v24 = vpop.f32.mrf.mxu2 }
 0x96d   :  { %1800 = vrcp.f32 %v416_v23  ;;  %v428_v28 = vand.u32 2147483648, %v416_v23  ;;  %v426_v30 = vand.u32 2147483647, %v416_v23  ;;  %vm422_vm1 = vweird.f32 %v416_v23 }
 0x96f   :  { %v429_v22 = vor.u32 1.1754944e-38, %v428_v28  ;;  %vm427_vm3 = vcmp.eq.f32.partialorder %v426_v30, 8.507059e+37 }
 0x973   :  { %v1801_v25 = vpop.eup %1800 }
 0x974   :  { %v418_v26 = vmul.f32 %v1801_v25, %v416_v23  ;;  %vm423_vm15 = vweird.f32 %v1801_v25 }
 0x975   :  { %vm424_vm2 = vmor %vm422_vm1, %vm423_vm15 }
 0x976   :  { %v419_v27 = vsub.f32 1.0, %v418_v26 }
 0x978   :  { %v420_v29 = vmul.f32 %v1801_v25, %v419_v27 }
 0x97a   :  { %v421_v31 = vadd.f32 %v1801_v25, %v420_v29 }
 0x97c   :  { %v425_v33 = vsel %vm424_vm2, %v1801_v25, %v421_v31 }
 0x97d   :  { %v430_v38 = vsel %vm427_vm3, %v429_v22, %v425_v33 }
 0x97e   :  { %v432_v39 = vmul.f32 2.0, %v430_v38  ;;  %v434_v43 = vmul.f32 %v430_v38, %v2134_v10  ;;  %v1692_v10 = vld [vmem:[%s2562_s1 + $0x8] sm:$0xf] }
 0x980   :  { %v1690_v40 = vadd.f32 -1.0, %v432_v39 }
 0x982   :  { %436 = vrot.lane.b32.xlu1 %v1690_v40, %s1988_s27 }
 0x9f4   :  { %v437_v41 = vpop.permute.xlu1 %436 }
 0x9f5   :  { %v439_v42 = vmul.f32 %v437_v41, %v430_v38 }
 0x9f7   :  { %441 = vrot.lane.b32.xlu2 %v439_v42, %s1989_s28 }
 0xa51   :  { %v442_v46 = vpop.permute.xlu2 %441 }
 0xa52   :  { %v2202_v47 = vadd.f32 %v442_v46, %v434_v43 }
 0xa54   :  { %1802 = vtanh.f32 %v2202_v47 }
 0xa5a   :  { %v1803_v48 = vpop.eup %1802 }
 0xa5b   :  { %447 = vrot.lane.b32.xlu1 %v1803_v48, %s1988_s27 }
 0xacd   :  { %v448_v49 = vpop.permute.xlu1 %447 }
 0xace   :  { %v2206_v50 = vmul.f32 %v448_v49, %v430_v38 }
 0xad0   :  { %v461_v51 = vpack.c.bf16 %v2206_v50, %v2206_v50 }
 0xad2   :  { %463 = vrot.lane.b32.xlu0 %v461_v51, %s1989_s28 }
 0xb44   :  { %v464_v52 = vpop.permute.xlu0 %463 }
 0xb45   :  { %1693 = vmatmul.msk.bf16.vlgmr.msra.gmra.mxu0 %vm78_vm5, %v464_v52  ;;  %1698 = vmatmul.msk.bf16.vlgmr.msrb.gmra.mxu1 %vm78_vm5, %v464_v52 }
 0xb46   :  { %756 = vmatpush.bf16.msra.mxu0 %v2094_v34  ;;  %872 = vmatpush.bf16.msrb.mxu1 %v2058_v0 }
 0xb4a   :  { %757 = vmatpush.bf16.msra.mxu0 %v2105_v36  ;;  %873 = vmatpush.bf16.msrb.mxu1 %v2073_v4 }
 0xbc2   :  { %v477_v53 = vpop.f32.mrf.mxu0  ;;  %v2220_v54 = vpop.f32.mrf.mxu1 }
 0xbc3   :  { %v481_v55 = vadd.f32 %v1692_v10, %v477_v53 }
 0xbc5   :  { %v482_v56 = vsel %vm296_vm10, %v481_v55, -inf }
 0xbc6   :  { %483 = vmax.xlane.f32.xlu1 %v482_v56 }
 0xbca   :  { %v479_v57 = vpop.f32.mrf.mxu0  ;;  %v576_v58 = vpop.f32.mrf.mxu1 }
 0xc39   :  { %v484_v44 = vpop.xlane.xlu1 %483 }
 0xc3a   :  { %v485_v59 = vsub.f32 %v481_v55, %v484_v44 }
 0xc3c   :  { %v486_v60 = vmul.f32 1.442695, %v485_v59 }
 0xc3e   :  { %1804 = vpow2.f32 %v486_v60 }
 0xc44   :  { %v1805_v61 = vpop.eup %1804 }
 0xc45   :  { %v488_v62 = vsel %vm296_vm10, %v1805_v61, 0.0 }
 0xc46   :  { %489 = vadd.xlane.f32.xlu2 %v488_v62 }
 0xcb9   :  { %v490_v63 = vpop.xlane.xlu2 %489 }
 0xcba   :  { %1806 = vrcp.f32 %v490_v63 }
 0xcc0   :  { %v1807_v2 = vpop.eup %1806 }
 0xcc1   :  { %v492_v3 = vmul.f32 16.0, %v1807_v2 }
 0xcc3   :  { %v493_v8 = vmul.f32 %v1805_v61, %v492_v3 }
 0xcc5   :  { %v494_v9 = vmul.f32 %v1691_v6, %v493_v8 }
 0xcc7   :  { %v495_v11 = vpack.c.bf16 %v494_v9, %v494_v9 }
 0xcc9   :  { %1695 = vmatmul.msk.bf16.vlgmr.msra.gmra.mxu3 %vm101_vm0, %v495_v11 }
 0xcca   :  { %844 = vmatpush.bf16.msra.mxu3 %v2141_v12 }
 0xcce   :  { %845 = vmatpush.bf16.msra.mxu3 %v2147_v13 }
 0xd4c   :  { %v521_v14 = vpop.f32.mrf.mxu3 }
 0xd4d   :  { %v522_v32 = vadd.f32 %v521_v14, %v2197_v19 }
 0xd4f   :  { %v525_v16 = vadd.f32 %v2082_v7, %v522_v32 }
 0xd51   :  { %v1696_v17 = vmul.f32 -1.442695, %v525_v16 }
 0xd53   :  { %1808 = vpow2.f32 %v1696_v17 }
 0xd54   :  { %v523_v18 = vpop.f32.mrf.mxu3 }
 0xd59   :  { %v1809_v20 = vpop.eup %1808 }
 0xd5a   :  { %v529_v21 = vadd.f32 1.0, %v1809_v20 }
 0xd5c   :  { %1810 = vrcp.f32 %v529_v21  ;;  %v541_v26 = vand.u32 2147483648, %v529_v21  ;;  %v539_v28 = vand.u32 2147483647, %v529_v21  ;;  %vm535_vm6 = vweird.f32 %v529_v21 }
 0xd5e   :  { %v542_v30 = vor.u32 1.1754944e-38, %v541_v26  ;;  %vm540_vm8 = vcmp.eq.f32.partialorder %v539_v28, 8.507059e+37  ;;  %v1703_v26 = vld [vmem:[%s2562_s1 + $0xc] sm:$0xf] }
 0xd62   :  { %v1811_v23 = vpop.eup %1810 }
 0xd63   :  { %v531_v24 = vmul.f32 %v1811_v23, %v529_v21  ;;  %vm536_vm4 = vweird.f32 %v1811_v23 }
 0xd64   :  { %vm537_vm7 = vmor %vm535_vm6, %vm536_vm4 }
 0xd65   :  { %v532_v25 = vsub.f32 1.0, %v531_v24 }
 0xd67   :  { %v533_v27 = vmul.f32 %v1811_v23, %v532_v25 }
 0xd69   :  { %v534_v29 = vadd.f32 %v1811_v23, %v533_v27 }
 0xd6b   :  { %v538_v19 = vsel %vm537_vm7, %v1811_v23, %v534_v29 }
 0xd6c   :  { %v543_v31 = vsel %vm540_vm8, %v542_v30, %v538_v19 }
 0xd6d   :  { %v545_v22 = vmul.f32 2.0, %v543_v31  ;;  %v547_v40 = vmul.f32 %v543_v31, %v2185_v5 }
 0xd6f   :  { %v1697_v33 = vadd.f32 -1.0, %v545_v22 }
 0xd71   :  { %549 = vrot.lane.b32.xlu0 %v1697_v33, %s1988_s27 }
 0xde3   :  { %v550_v38 = vpop.permute.xlu0 %549 }
 0xde4   :  { %v552_v39 = vmul.f32 %v550_v38, %v543_v31 }
 0xde6   :  { %554 = vrot.lane.b32.xlu0 %v552_v39, %s1989_s28 }
 0xe58   :  { %v555_v41 = vpop.permute.xlu0 %554 }
 0xe59   :  { %v2235_v42 = vadd.f32 %v555_v41, %v547_v40 }
 0xe5b   :  { %1812 = vtanh.f32 %v2235_v42 }
 0xe61   :  { %v1813_v43 = vpop.eup %1812 }
 0xe62   :  { %560 = vrot.lane.b32.xlu0 %v1813_v43, %s1988_s27 }
 0xed4   :  { %v561_v46 = vpop.permute.xlu0 %560 }
 0xed5   :  { %v563_v48 = vmul.f32 %v561_v46, %v543_v31  ;;  %v1702_v46 = vld [vmem:[%s2561_s0 + $0xc] sm:$0xf] }
 0xed7   :  { %v564_v49 = vpack.c.bf16 %v563_v48, %v563_v48 }
 0xed9   :  { %579 = vrot.lane.b32.xlu0 %v564_v49, %s1989_s28 }
 0xf4b   :  { %v580_v51 = vpop.permute.xlu0 %579 }
 0xf4c   :  { %1699 = vmatmul.msk.bf16.vlgmr.msrb.gmra.mxu0 %vm78_vm5, %v580_v51  ;;  %1705 = vmatmul.msk.bf16.vlgmr.msrb.gmra.mxu3 %vm78_vm5, %v580_v51 }
 0xf4d   :  { %889 = vmatpush.bf16.msrb.mxu0 %v2063_v1  ;;  %960 = vmatpush.bf16.msrb.mxu3 %v2099_v35 }
 0xf51   :  { %961 = vmatpush.bf16.msrb.mxu3 %v2111_v37 }
 0xfc9   :  { %v593_v5 = vpop.f32.mrf.mxu0 }
 0xfca   :  { %v594_v52 = vadd.f32 %v593_v5, %v2220_v54 }
 0xfcc   :  { %v597_v10 = vadd.f32 %v2129_v45, %v594_v52 }
 0xfce   :  { %v1700_v53 = vmul.f32 -1.442695, %v597_v10 }
 0xfcf   :  { %v2247_v55 = vpop.f32.mrf.mxu3 }
 0xfd0   :  { %1814 = vpow2.f32 %v1700_v53 }
 0xfd1   :  { %v595_v56 = vpop.f32.mrf.mxu0 }
 0xfd6   :  { %v1815_v57 = vpop.eup %1814 }
 0xfd7   :  { %v601_v58 = vadd.f32 1.0, %v1815_v57  ;;  %v692_v44 = vpop.f32.mrf.mxu3 }
 0xfd9   :  { %1816 = vrcp.f32 %v601_v58  ;;  %v613_v62 = vand.u32 2147483648, %v601_v58  ;;  %v611_v2 = vand.u32 2147483647, %v601_v58  ;;  %vm607_vm11 = vweird.f32 %v601_v58 }
 0xfdb   :  { %v614_v54 = vor.u32 1.1754944e-38, %v613_v62  ;;  %vm612_vm13 = vcmp.eq.f32.partialorder %v611_v2, 8.507059e+37 }
 0xfdf   :  { %v1817_v59 = vpop.eup %1816 }
 0xfe0   :  { %v603_v60 = vmul.f32 %v1817_v59, %v601_v58  ;;  %vm608_vm9 = vweird.f32 %v1817_v59 }
 0xfe1   :  { %vm609_vm12 = vmor %vm607_vm11, %vm608_vm9 }
 0xfe2   :  { %v604_v61 = vsub.f32 1.0, %v603_v60 }
 0xfe4   :  { %v605_v63 = vmul.f32 %v1817_v59, %v604_v61 }
 0xfe6   :  { %v606_v3 = vadd.f32 %v1817_v59, %v605_v63 }
 0xfe8   :  { %v610_v6 = vsel %vm609_vm12, %v1817_v59, %v606_v3 }
 0xfe9   :  { %v615_v8 = vsel %vm612_vm13, %v614_v54, %v610_v6 }
 0xfea   :  { %v617_v9 = vmul.f32 2.0, %v615_v8  ;;  %v619_v16 = vmul.f32 %v615_v8, %v2202_v47 }
 0xfec   :  { %v1701_v11 = vadd.f32 -1.0, %v617_v9 }
 0xfee   :  { %621 = vrot.lane.b32.xlu1 %v1701_v11, %s1988_s27 }
0x1060   :  { %v622_v14 = vpop.permute.xlu1 %621 }
0x1061   :  { %v624_v32 = vmul.f32 %v622_v14, %v615_v8 }
0x1063   :  { %626 = vrot.lane.b32.xlu0 %v624_v32, %s1989_s28 }
0x10d5   :  { %v627_v17 = vpop.permute.xlu0 %626 }
0x10d6   :  { %v2252_v18 = vadd.f32 %v627_v17, %v619_v16 }
0x10d8   :  { %1818 = vtanh.f32 %v2252_v18 }
0x10de   :  { %v1819_v20 = vpop.eup %1818 }
0x10df   :  { %632 = vrot.lane.b32.xlu2 %v1819_v20, %s1988_s27 }
0x1139   :  { %v633_v21 = vpop.permute.xlu2 %632 }
0x113a   :  { %v2256_v23 = vmul.f32 %v633_v21, %v615_v8 }
0x113c   :  { %v646_v24 = vpack.c.bf16 %v2256_v23, %v2256_v23 }
0x113e   :  { %648 = vrot.lane.b32.xlu0 %v646_v24, %s1989_s28 }
0x11b0   :  { %v649_v25 = vpop.permute.xlu0 %648 }
0x11b1   :  { %1704 = vmatmul.msk.bf16.vlgmr.msrb.gmra.mxu2 %vm78_vm5, %v649_v25  ;;  %1709 = vmatmul.msk.bf16.vlgmr.msra.gmra.mxu0 %vm78_vm5, %v649_v25 }
0x11b2   :  { %941 = vmatpush.bf16.msrb.mxu2 %v2094_v34  ;;  %1057 = vmatpush.bf16.msra.mxu0 %v2058_v0 }
0x11b6   :  { %942 = vmatpush.bf16.msrb.mxu2 %v2105_v36  ;;  %1058 = vmatpush.bf16.msra.mxu0 %v2073_v4 }
0x122e   :  { %v2267_v47 = vpop.f32.mrf.mxu0 }
0x1234   :  { %v662_v27 = vpop.f32.mrf.mxu2 }
0x1235   :  { %v666_v28 = vadd.f32 %v1703_v26, %v662_v27 }
0x1236   :  { %v761_v29 = vpop.f32.mrf.mxu0 }
0x1237   :  { %v667_v30 = vsel %vm296_vm10, %v666_v28, -inf }
0x1238   :  { %668 = vmax.xlane.f32.xlu0 %v667_v30 }
0x123c   :  { %v664_v19 = vpop.f32.mrf.mxu2 }
0x12ab   :  { %v669_v31 = vpop.xlane.xlu0 %668 }
0x12ac   :  { %v670_v22 = vsub.f32 %v666_v28, %v669_v31 }
0x12ae   :  { %v671_v33 = vmul.f32 1.442695, %v670_v22 }
0x12b0   :  { %1820 = vpow2.f32 %v671_v33 }
0x12b6   :  { %v1821_v38 = vpop.eup %1820 }
0x12b7   :  { %v673_v39 = vsel %vm296_vm10, %v1821_v38, 0.0 }
0x12b8   :  { %674 = vadd.xlane.f32.xlu1 %v673_v39 }
0x132b   :  { %v675_v40 = vpop.xlane.xlu1 %674 }
0x132c   :  { %1822 = vrcp.f32 %v675_v40 }
0x1332   :  { %v1823_v41 = vpop.eup %1822 }
0x1333   :  { %v677_v43 = vmul.f32 16.0, %v1823_v41 }
0x1335   :  { %v678_v48 = vmul.f32 %v1821_v38, %v677_v43 }
0x1337   :  { %v679_v49 = vmul.f32 %v1702_v46, %v678_v48 }
0x1339   :  { %v680_v51 = vpack.c.bf16 %v679_v49, %v679_v49 }
0x133b   :  { %1706 = vmatmul.msk.bf16.vlgmr.msra.gmra.mxu1 %vm101_vm0, %v680_v51 }
0x133c   :  { %1029 = vmatpush.bf16.msra.mxu1 %v2141_v12 }
0x1340   :  { %1030 = vmatpush.bf16.msra.mxu1 %v2147_v13 }
0x13b8   :  { %v706_v5 = vpop.f32.mrf.mxu1 }
0x13b9   :  { %v707_v52 = vadd.f32 %v706_v5, %v2247_v55 }
0x13bb   :  { %v710_v10 = vadd.f32 %v2082_v7, %v707_v52 }
0x13bd   :  { %v1707_v53 = vmul.f32 -1.442695, %v710_v10 }
0x13bf   :  { %1824 = vpow2.f32 %v1707_v53 }
0x13c0   :  { %v708_v56 = vpop.f32.mrf.mxu1 }
0x13c5   :  { %v1825_v57 = vpop.eup %1824 }
0x13c6   :  { %v714_v58 = vadd.f32 1.0, %v1825_v57 }
0x13c8   :  { %1826 = vrcp.f32 %v714_v58  ;;  %v726_v61 = vand.u32 2147483648, %v714_v58  ;;  %v724_v63 = vand.u32 2147483647, %v714_v58  ;;  %vm720_vm15 = vweird.f32 %v714_v58 }
0x13ca   :  { %v727_v3 = vor.u32 1.1754944e-38, %v726_v61  ;;  %vm725_vm2 = vcmp.eq.f32.partialorder %v724_v63, 8.507059e+37 }
0x13ce   :  { %v1827_v44 = vpop.eup %1826 }
0x13cf   :  { %v716_v59 = vmul.f32 %v1827_v44, %v714_v58  ;;  %vm721_vm14 = vweird.f32 %v1827_v44 }
0x13d0   :  { %vm722_vm1 = vmor %vm720_vm15, %vm721_vm14 }
0x13d1   :  { %v717_v60 = vsub.f32 1.0, %v716_v59 }
0x13d3   :  { %v718_v62 = vmul.f32 %v1827_v44, %v717_v60 }
0x13d5   :  { %v719_v2 = vadd.f32 %v1827_v44, %v718_v62 }
0x13d7   :  { %v723_v55 = vsel %vm722_vm1, %v1827_v44, %v719_v2 }
0x13d8   :  { %v728_v54 = vsel %vm725_vm2, %v727_v3, %v723_v55 }
0x13d9   :  { %v730_v6 = vmul.f32 2.0, %v728_v54  ;;  %v732_v14 = vmul.f32 %v728_v54, %v2235_v42 }
0x13db   :  { %v1708_v8 = vadd.f32 -1.0, %v730_v6 }
0x13dd   :  { %734 = vrot.lane.b32.xlu2 %v1708_v8, %s1988_s27 }
0x1437   :  { %v735_v9 = vpop.permute.xlu2 %734 }
0x1438   :  { %v737_v11 = vmul.f32 %v735_v9, %v728_v54 }
0x143a   :  { %739 = vrot.lane.b32.xlu2 %v737_v11, %s1989_s28  ;;  %v1713_v11 = vld [vmem:[%s2561_s0 + $0x10] sm:$0xf] }
0x1494   :  { %v740_v32 = vpop.permute.xlu2 %739 }
0x1495   :  { %v2285_v16 = vadd.f32 %v740_v32, %v732_v14 }
0x1497   :  { %1828 = vtanh.f32 %v2285_v16 }
0x149d   :  { %v1829_v17 = vpop.eup %1828 }
0x149e   :  { %745 = vrot.lane.b32.xlu2 %v1829_v17, %s1988_s27 }
0x14f8   :  { %v746_v20 = vpop.permute.xlu2 %745 }
0x14f9   :  { %v748_v21 = vmul.f32 %v746_v20, %v728_v54 }
0x14fb   :  { %v749_v24 = vpack.c.bf16 %v748_v21, %v748_v21 }
0x14fd   :  { %764 = vrot.lane.b32.xlu2 %v749_v24, %s1989_s28 }
0x1557   :  { %v765_v25 = vpop.permute.xlu2 %764 }
0x1558   :  { %1710 = vmatmul.msk.bf16.vlgmr.msra.gmra.mxu2 %vm78_vm5, %v765_v25  ;;  %1716 = vmatmul.msk.bf16.vlgmr.msrb.gmra.mxu1 %vm78_vm5, %v765_v25 }
0x1559   :  { %1074 = vmatpush.bf16.msra.mxu2 %v2063_v1  ;;  %1145 = vmatpush.bf16.msrb.mxu1 %v2099_v35 }
0x155d   :  { %1146 = vmatpush.bf16.msrb.mxu1 %v2111_v37 }
0x15d5   :  { %v2295_v42 = vpop.f32.mrf.mxu1 }
0x15db   :  { %v778_v26 = vpop.f32.mrf.mxu2 }
0x15dc   :  { %v779_v27 = vadd.f32 %v778_v26, %v2267_v47 }
0x15dd   :  { %v877_v28 = vpop.f32.mrf.mxu1 }
0x15de   :  { %v782_v29 = vadd.f32 %v2129_v45, %v779_v27 }
0x15e0   :  { %v1711_v30 = vmul.f32 -1.442695, %v782_v29 }
0x15e2   :  { %1830 = vpow2.f32 %v1711_v30 }
0x15e3   :  { %v780_v19 = vpop.f32.mrf.mxu2 }
0x15e8   :  { %v1831_v31 = vpop.eup %1830 }
0x15e9   :  { %v786_v22 = vadd.f32 1.0, %v1831_v31 }
0x15eb   :  { %1832 = vrcp.f32 %v786_v22  ;;  %v798_v39 = vand.u32 2147483648, %v786_v22  ;;  %v796_v41 = vand.u32 2147483647, %v786_v22  ;;  %vm792_vm4 = vweird.f32 %v786_v22 }
0x15ed   :  { %v799_v47 = vor.u32 1.1754944e-38, %v798_v39  ;;  %vm797_vm7 = vcmp.eq.f32.partialorder %v796_v41, 8.507059e+37 }
0x15f1   :  { %v1833_v33 = vpop.eup %1832 }
0x15f2   :  { %v788_v1 = vmul.f32 %v1833_v33, %v786_v22  ;;  %vm793_vm3 = vweird.f32 %v1833_v33 }
0x15f3   :  { %vm794_vm6 = vmor %vm792_vm4, %vm793_vm3 }
0x15f4   :  { %v789_v38 = vsub.f32 1.0, %v788_v1 }
0x15f6   :  { %v790_v40 = vmul.f32 %v1833_v33, %v789_v38 }
0x15f8   :  { %v791_v43 = vadd.f32 %v1833_v33, %v790_v40 }
0x15fa   :  { %v795_v46 = vsel %vm794_vm6, %v1833_v33, %v791_v43 }
0x15fb   :  { %v800_v48 = vsel %vm797_vm7, %v799_v47, %v795_v46 }
0x15fc   :  { %v802_v49 = vmul.f32 2.0, %v800_v48  ;;  %v804_v10 = vmul.f32 %v800_v48, %v2252_v18  ;;  %v1714_v18 = vld [vmem:[%s2562_s1 + $0x10] sm:$0xf] }
0x15fe   :  { %v1712_v51 = vadd.f32 -1.0, %v802_v49 }
0x1600   :  { %806 = vrot.lane.b32.xlu0 %v1712_v51, %s1988_s27 }
0x1672   :  { %v807_v5 = vpop.permute.xlu0 %806 }
0x1673   :  { %v809_v52 = vmul.f32 %v807_v5, %v800_v48 }
0x1675   :  { %811 = vrot.lane.b32.xlu2 %v809_v52, %s1989_s28 }
0x16cf   :  { %v812_v53 = vpop.permute.xlu2 %811 }
0x16d0   :  { %v2302_v56 = vadd.f32 %v812_v53, %v804_v10 }
0x16d2   :  { %1834 = vtanh.f32 %v2302_v56 }
0x16d8   :  { %v1835_v57 = vpop.eup %1834 }
0x16d9   :  { %817 = vrot.lane.b32.xlu1 %v1835_v57, %s1988_s27 }
0x174b   :  { %v818_v58 = vpop.permute.xlu1 %817 }
0x174c   :  { %v2306_v44 = vmul.f32 %v818_v58, %v800_v48 }
0x174e   :  { %v831_v59 = vpack.c.bf16 %v2306_v44, %v2306_v44 }
0x1750   :  { %833 = vrot.lane.b32.xlu2 %v831_v59, %s1989_s28 }
0x17aa   :  { %v834_v60 = vpop.permute.xlu2 %833 }
0x17ab   :  { %1715 = vmatmul.msk.bf16.vlgmr.msra.gmra.mxu3 %vm78_vm5, %v834_v60  ;;  %1720 = vmatmul.msk.bf16.vlgmr.msrb.gmra.mxu2 %vm78_vm5, %v834_v60 }
0x17ac   :  { %1126 = vmatpush.bf16.msra.mxu3 %v2094_v34  ;;  %1242 = vmatpush.bf16.msrb.mxu2 %v2058_v0 }
0x17b0   :  { %1127 = vmatpush.bf16.msra.mxu3 %v2105_v36  ;;  %1243 = vmatpush.bf16.msrb.mxu2 %v2073_v4 }
0x182e   :  { %v847_v61 = vpop.f32.mrf.mxu3  ;;  %v2320_v62 = vpop.f32.mrf.mxu2 }
0x182f   :  { %v851_v63 = vadd.f32 %v1714_v18, %v847_v61 }
0x1831   :  { %v852_v2 = vsel %vm296_vm10, %v851_v63, -inf }
0x1832   :  { %853 = vmax.xlane.f32.xlu2 %v852_v2 }
0x1836   :  { %v849_v3 = vpop.f32.mrf.mxu3  ;;  %v946_v55 = vpop.f32.mrf.mxu2 }
0x18a5   :  { %v854_v34 = vpop.xlane.xlu2 %853 }
0x18a6   :  { %v855_v54 = vsub.f32 %v851_v63, %v854_v34 }
0x18a8   :  { %v856_v0 = vmul.f32 1.442695, %v855_v54 }
0x18aa   :  { %1836 = vpow2.f32 %v856_v0 }
0x18b0   :  { %v1837_v36 = vpop.eup %1836 }
0x18b1   :  { %v858_v4 = vsel %vm296_vm10, %v1837_v36, 0.0 }
0x18b2   :  { %859 = vadd.xlane.f32.xlu0 %v858_v4 }
0x1925   :  { %v860_v6 = vpop.xlane.xlu0 %859 }
0x1926   :  { %1838 = vrcp.f32 %v860_v6 }
0x192c   :  { %v1839_v8 = vpop.eup %1838 }
0x192d   :  { %v862_v9 = vmul.f32 16.0, %v1839_v8 }
0x192f   :  { %v863_v14 = vmul.f32 %v1837_v36, %v862_v9 }
0x1931   :  { %v864_v32 = vmul.f32 %v1713_v11, %v863_v14 }
0x1933   :  { %v865_v17 = vpack.c.bf16 %v864_v32, %v864_v32 }
0x1935   :  { %1717 = vmatmul.msk.bf16.vlgmr.msrb.gmra.mxu0 %vm101_vm0, %v865_v17 }
0x1936   :  { %1214 = vmatpush.bf16.msrb.mxu0 %v2141_v12 }
0x193a   :  { %1215 = vmatpush.bf16.msrb.mxu0 %v2147_v13 }
0x19b2   :  { %v891_v20 = vpop.f32.mrf.mxu0 }
0x19b3   :  { %v892_v21 = vadd.f32 %v891_v20, %v2295_v42 }
0x19b5   :  { %v895_v24 = vadd.f32 %v2082_v7, %v892_v21 }
0x19b7   :  { %v1718_v25 = vmul.f32 -1.442695, %v895_v24  ;;  %v1902_v24 = vld [vmem:[%s2565_s4 + $0x8] sm:$0xff] }
0x19b9   :  { %1840 = vpow2.f32 %v1718_v25  ;;  %v2380_v25 = vld [vmem:[%s2568_s7] sm:$0xff] }
0x19ba   :  { %v893_v26 = vpop.f32.mrf.mxu0 }
0x19bb   :  { %v1904_v26 = vld [vmem:[%s2565_s4] sm:$0xff] }
0x19bf   :  { %v1841_v27 = vpop.eup %1840 }
0x19c0   :  { %v899_v28 = vadd.f32 1.0, %v1841_v27  ;;  %v1725_v27 = vld [vmem:[%s2562_s1 + $0x14] sm:$0xf] }
0x19c2   :  { %1842 = vrcp.f32 %v899_v28  ;;  %v911_v31 = vand.u32 2147483648, %v899_v28  ;;  %v909_v12 = vand.u32 2147483647, %v899_v28  ;;  %vm905_vm9 = vweird.f32 %v899_v28 }
0x19c4   :  { %v912_v13 = vor.u32 1.1754944e-38, %v911_v31  ;;  %vm910_vm12 = vcmp.eq.f32.partialorder %v909_v12, 8.507059e+37 }
0x19c8   :  { %v1843_v29 = vpop.eup %1842 }
0x19c9   :  { %v901_v30 = vmul.f32 %v1843_v29, %v899_v28  ;;  %vm906_vm8 = vweird.f32 %v1843_v29 }
0x19ca   :  { %vm907_vm11 = vmor %vm905_vm9, %vm906_vm8 }
0x19cb   :  { %v902_v19 = vsub.f32 1.0, %v901_v30 }
0x19cd   :  { %v903_v22 = vmul.f32 %v1843_v29, %v902_v19 }
0x19cf   :  { %v904_v33 = vadd.f32 %v1843_v29, %v903_v22 }
0x19d1   :  { %v908_v42 = vsel %vm907_vm11, %v1843_v29, %v904_v33 }
0x19d2   :  { %v913_v7 = vsel %vm910_vm12, %v912_v13, %v908_v42 }
0x19d3   :  { %v915_v1 = vmul.f32 2.0, %v913_v7  ;;  %v917_v41 = vmul.f32 %v913_v7, %v2285_v16  ;;  %v2345_v16 = vld [vmem:[%s2564_s3] sm:$0xff] }
0x19d5   :  { %v1719_v38 = vadd.f32 -1.0, %v915_v1 }
0x19d7   :  { %919 = vrot.lane.b32.xlu1 %v1719_v38, %s1988_s27 }
0x1a49   :  { %v920_v39 = vpop.permute.xlu1 %919 }
0x1a4a   :  { %v922_v40 = vmul.f32 %v920_v39, %v913_v7 }
0x1a4c   :  { %924 = vrot.lane.b32.xlu1 %v922_v40, %s1989_s28  ;;  %v1724_v40 = vld [vmem:[%s2561_s0 + $0x14] sm:$0xf] }
0x1abe   :  { %v925_v43 = vpop.permute.xlu1 %924 }
0x1abf   :  { %v2335_v47 = vadd.f32 %v925_v43, %v917_v41 }
0x1ac1   :  { %1844 = vtanh.f32 %v2335_v47 }
0x1ac7   :  { %v1845_v46 = vpop.eup %1844 }
0x1ac8   :  { %930 = vrot.lane.b32.xlu1 %v1845_v46, %s1988_s27 }
0x1b3a   :  { %v931_v48 = vpop.permute.xlu1 %930 }
0x1b3b   :  { %v933_v49 = vmul.f32 %v931_v48, %v913_v7  ;;  %v1905_v48 = vld [vmem:[%s2563_s2 + $0x8] sm:$0xff] }
0x1b3d   :  { %v934_v51 = vpack.c.bf16 %v933_v49, %v933_v49  ;;  %v1906_v49 = vld [vmem:[%s2563_s2] sm:$0xff] }
0x1b3f   :  { %949 = vrot.lane.b32.xlu1 %v934_v51, %s1989_s28 }
0x1bb1   :  { %v950_v5 = vpop.permute.xlu1 %949 }
0x1bb2   :  { %1721 = vmatmul.msk.bf16.vlgmr.msrb.gmra.mxu3 %vm78_vm5, %v950_v5  ;;  %1727 = vmatmul.msk.bf16.vlgmr.msra.gmra.mxu0 %vm78_vm5, %v950_v5 }
0x1bb3   :  { %1259 = vmatpush.bf16.msrb.mxu3 %v2345_v16  ;;  %1330 = vmatpush.bf16.msra.mxu0 %v2099_v35 }
0x1bb7   :  { %1331 = vmatpush.bf16.msra.mxu0 %v2111_v37 }
0x1c2f   :  { %v2350_v52 = vpop.f32.mrf.mxu0 }
0x1c35   :  { %v963_v10 = vpop.f32.mrf.mxu3 }
0x1c36   :  { %v964_v53 = vadd.f32 %v963_v10, %v2320_v62  ;;  %v2407_v10 = vld [vmem:[%s2566_s5] ss:$0 sm:$0xff]  ;;  %s1617_s5 = sshll.u32 %s2572_s11, 4  ;;  %s1618_s5 = int_to_ptr.hbm [resolvable:$true] %s1617_s5 }
0x1c37   :  { %v1062_v57 = vpop.f32.mrf.mxu0 }
0x1c38   :  { %v967_v58 = vadd.f32 %v2129_v45, %v964_v53 }
0x1c3a   :  { %v1722_v59 = vmul.f32 -1.442695, %v967_v58 }
0x1c3c   :  { %1846 = vpow2.f32 %v1722_v59 }
0x1c3d   :  { %v965_v60 = vpop.f32.mrf.mxu3 }
0x1c42   :  { %v1847_v18 = vpop.eup %1846 }
0x1c43   :  { %v971_v61 = vadd.f32 1.0, %v1847_v18 }
0x1c45   :  { %1848 = vrcp.f32 %v971_v61  ;;  %v983_v35 = vand.u32 2147483648, %v971_v61  ;;  %v981_v37 = vand.u32 2147483647, %v971_v61  ;;  %vm977_vm14 = vweird.f32 %v971_v61 }
0x1c47   :  { %v984_v62 = vor.u32 1.1754944e-38, %v983_v35  ;;  %vm982_vm1 = vcmp.eq.f32.partialorder %v981_v37, 8.507059e+37 }
0x1c4b   :  { %v1849_v63 = vpop.eup %1848 }
0x1c4c   :  { %v973_v2 = vmul.f32 %v1849_v63, %v971_v61  ;;  %vm978_vm13 = vweird.f32 %v1849_v63 }
0x1c4d   :  { %vm979_vm15 = vmor %vm977_vm14, %vm978_vm13 }
0x1c4e   :  { %v974_v3 = vsub.f32 1.0, %v973_v2 }
0x1c50   :  { %v975_v55 = vmul.f32 %v1849_v63, %v974_v3 }
0x1c52   :  { %v976_v34 = vadd.f32 %v1849_v63, %v975_v55 }
0x1c54   :  { %v980_v54 = vsel %vm979_vm15, %v1849_v63, %v976_v34 }
0x1c55   :  { %v985_v45 = vsel %vm982_vm1, %v984_v62, %v980_v54 }
0x1c56   :  { %v987_v0 = vmul.f32 2.0, %v985_v45  ;;  %v989_v8 = vmul.f32 %v985_v45, %v2302_v56  ;;  %v2371_v56 = vld [vmem:[%s2568_s7 + $0x8] sm:$0xff]  ;;  %s1591_s7 = sshll.u32 %s2570_s9, 4  ;;  %s1994_s9 = smov [#allocation6]   ;;  %s1592_s7 = int_to_ptr.hbm [resolvable:$true] %s1591_s7 }
0x1c57   :  { %s1615_s22 = sshll.u32 %s1994_s9, 4  ;;  %s1616_s22 = int_to_ptr.vmem [resolvable:$true] %s1615_s22 }
0x1c58   :  { %v1723_v36 = vadd.f32 -1.0, %v987_v0 }
0x1c5a   :  { %991 = vrot.lane.b32.xlu2 %v1723_v36, %s1988_s27 }
0x1cb4   :  { %v992_v4 = vpop.permute.xlu2 %991 }
0x1cb5   :  { %v994_v6 = vmul.f32 %v992_v4, %v985_v45 }
0x1cb7   :  { %996 = vrot.lane.b32.xlu0 %v994_v6, %s1989_s28 }
0x1d29   :  { %v997_v9 = vpop.permute.xlu0 %996 }
0x1d2a   :  { %v2357_v11 = vadd.f32 %v997_v9, %v989_v8 }
0x1d2c   :  { %1850 = vtanh.f32 %v2357_v11 }
0x1d32   :  { %v1851_v14 = vpop.eup %1850 }
0x1d33   :  { %1002 = vrot.lane.b32.xlu1 %v1851_v14, %s1988_s27 }
0x1da5   :  { %v1003_v32 = vpop.permute.xlu1 %1002 }
0x1da6   :  { %v2361_v17 = vmul.f32 %v1003_v32, %v985_v45 }
0x1da8   :  { %v1016_v20 = vpack.c.bf16 %v2361_v17, %v2361_v17 }
0x1daa   :  { %1018 = vrot.lane.b32.xlu1 %v1016_v20, %s1989_s28 }
0x1e1c   :  { %v1019_v21 = vpop.permute.xlu1 %1018 }
0x1e1d   :  { %1726 = vmatmul.msk.bf16.vlgmr.msra.gmra.mxu1 %vm78_vm5, %v1019_v21  ;;  %1731 = vmatmul.msk.bf16.vlgmr.msra.gmra.mxu3 %vm78_vm5, %v1019_v21  ;;  %v1909_v21 = vld [vmem:[%s2567_s6] sm:$0xff] }
0x1e1e   :  { %1311 = vmatpush.bf16.msra.mxu1 %v2371_v56  ;;  %1427 = vmatpush.bf16.msra.mxu3 %v1902_v24 }
0x1e22   :  { %1312 = vmatpush.bf16.msra.mxu1 %v2380_v25  ;;  %1428 = vmatpush.bf16.msra.mxu3 %v1904_v26 }
0x1e9a   :  { %v1032_v28 = vpop.f32.mrf.mxu1 }
0x1e9b   :  { %v1036_v29 = vadd.f32 %v1725_v27, %v1032_v28  ;;  %v2431_v27 = vld [vmem:[%s2569_s8] ss:$0 sm:$0xff] }
0x1e9d   :  { %v1037_v30 = vsel %vm296_vm10, %v1036_v29, -inf }
0x1e9e   :  { %1038 = vmax.xlane.f32.xlu1 %v1037_v30 }
0x1ea0   :  { %v2390_v19 = vpop.f32.mrf.mxu3 }
0x1ea2   :  { %v1034_v31 = vpop.f32.mrf.mxu1 }
0x1ea8   :  { %v1131_v22 = vpop.f32.mrf.mxu3 }
0x1f11   :  { %v1039_v12 = vpop.xlane.xlu1 %1038 }
0x1f12   :  { %v1040_v33 = vsub.f32 %v1036_v29, %v1039_v12 }
0x1f14   :  { %v1041_v13 = vmul.f32 1.442695, %v1040_v33 }
0x1f16   :  { %1852 = vpow2.f32 %v1041_v13 }
0x1f1c   :  { %v1853_v42 = vpop.eup %1852 }
0x1f1d   :  { %v1043_v7 = vsel %vm296_vm10, %v1853_v42, 0.0 }
0x1f1e   :  { %1044 = vadd.xlane.f32.xlu0 %v1043_v7 }
0x1f91   :  { %v1045_v1 = vpop.xlane.xlu0 %1044 }
0x1f92   :  { %1854 = vrcp.f32 %v1045_v1 }
0x1f98   :  { %v1855_v38 = vpop.eup %1854 }
0x1f99   :  { %v1047_v39 = vmul.f32 16.0, %v1855_v38 }
0x1f9b   :  { %v1048_v41 = vmul.f32 %v1853_v42, %v1047_v39 }
0x1f9d   :  { %v1049_v43 = vmul.f32 %v1724_v40, %v1048_v41 }
0x1f9f   :  { %v1050_v46 = vpack.c.bf16 %v1049_v43, %v1049_v43 }
0x1fa1   :  { %1728 = vmatmul.msk.bf16.vlgmr.msra.gmra.mxu2 %vm101_vm0, %v1050_v46 }
0x1fa2   :  { %1399 = vmatpush.bf16.msra.mxu2 %v1905_v48 }
0x1fa6   :  { %1400 = vmatpush.bf16.msra.mxu2 %v1906_v49 }
0x2024   :  { %v1076_v51 = vpop.f32.mrf.mxu2 }
0x2025   :  { %v1077_v5 = vadd.f32 %v1076_v51, %v2350_v52 }
0x2027   :  { %v1080_v53 = vadd.f32 %v2407_v10, %v1077_v5 }
0x2029   :  { %v1729_v57 = vmul.f32 -1.442695, %v1080_v53 }
0x202b   :  { %1856 = vpow2.f32 %v1729_v57 }
0x202c   :  { %v1078_v58 = vpop.f32.mrf.mxu2 }
0x2031   :  { %v1857_v59 = vpop.eup %1856 }
0x2032   :  { %v1084_v60 = vadd.f32 1.0, %v1857_v59 }
0x2034   :  { %1858 = vrcp.f32 %v1084_v60  ;;  %v1096_v2 = vand.u32 2147483648, %v1084_v60  ;;  %v1094_v52 = vand.u32 2147483647, %v1084_v60  ;;  %vm1090_vm3 = vweird.f32 %v1084_v60 }
0x2036   :  { %v1097_v55 = vor.u32 1.1754944e-38, %v1096_v2  ;;  %vm1095_vm6 = vcmp.eq.f32.partialorder %v1094_v52, 8.507059e+37 }
0x203a   :  { %v1859_v18 = vpop.eup %1858 }
0x203b   :  { %v1086_v61 = vmul.f32 %v1859_v18, %v1084_v60  ;;  %vm1091_vm2 = vweird.f32 %v1859_v18 }
0x203c   :  { %vm1092_vm4 = vmor %vm1090_vm3, %vm1091_vm2 }
0x203d   :  { %v1087_v63 = vsub.f32 1.0, %v1086_v61 }
0x203f   :  { %v1088_v3 = vmul.f32 %v1859_v18, %v1087_v63 }
0x2041   :  { %v1089_v35 = vadd.f32 %v1859_v18, %v1088_v3 }
0x2043   :  { %v1093_v37 = vsel %vm1092_vm4, %v1859_v18, %v1089_v35 }
0x2044   :  { %v1098_v34 = vsel %vm1095_vm6, %v1097_v55, %v1093_v37 }
0x2045   :  { %v1100_v62 = vmul.f32 2.0, %v1098_v34  ;;  %v1102_v36 = vmul.f32 %v1098_v34, %v2335_v47  ;;  %v1908_v47 = vld [vmem:[%s2567_s6 + $0x8] sm:$0xff] }
0x2047   :  { %v1730_v54 = vadd.f32 -1.0, %v1100_v62 }
0x2049   :  { %1104 = vrot.lane.b32.xlu2 %v1730_v54, %s1988_s27 }
0x20a3   :  { %v1105_v45 = vpop.permute.xlu2 %1104 }
0x20a4   :  { %v1107_v0 = vmul.f32 %v1105_v45, %v1098_v34 }
0x20a6   :  { %1109 = vrot.lane.b32.xlu2 %v1107_v0, %s1989_s28  ;;  %v1735_v0 = vld [vmem:[%s2561_s0 + $0x18] sm:$0xf] }
0x2100   :  { %v1110_v4 = vpop.permute.xlu2 %1109 }
0x2101   :  { %v2413_v6 = vadd.f32 %v1110_v4, %v1102_v36 }
0x2103   :  { %1860 = vtanh.f32 %v2413_v6 }
0x2109   :  { %v1861_v8 = vpop.eup %1860 }
0x210a   :  { %1115 = vrot.lane.b32.xlu2 %v1861_v8, %s1988_s27 }
0x2164   :  { %v1116_v9 = vpop.permute.xlu2 %1115 }
0x2165   :  { %v1118_v14 = vmul.f32 %v1116_v9, %v1098_v34 }
0x2167   :  { %v1119_v32 = vpack.c.bf16 %v1118_v14, %v1118_v14 }
0x2169   :  { %1134 = vrot.lane.b32.xlu2 %v1119_v32, %s1989_s28 }
0x21c3   :  { %v1135_v20 = vpop.permute.xlu2 %1134 }
0x21c4   :  { %1732 = vmatmul.msk.bf16.vlgmr.msrb.gmra.mxu1 %vm78_vm5, %v1135_v20  ;;  %1738 = vmatmul.msk.bf16.vlgmr.msrb.gmra.mxu2 %vm78_vm5, %v1135_v20 }
0x21c5   :  { %1444 = vmatpush.bf16.msrb.mxu1 %v2345_v16  ;;  %1515 = vmatpush.bf16.msrb.mxu2 %v1908_v47 }
0x21c9   :  { %1516 = vmatpush.bf16.msrb.mxu2 %v1909_v21 }
0x2241   :  { %v1148_v24 = vpop.f32.mrf.mxu1 }
0x2242   :  { %v1149_v26 = vadd.f32 %v1148_v24, %v2390_v19 }
0x2244   :  { %v1152_v16 = vadd.f32 %v2431_v27, %v1149_v26 }
0x2246   :  { %v1733_v28 = vmul.f32 -1.442695, %v1152_v16 }
0x2247   :  { %v2434_v29 = vpop.f32.mrf.mxu2 }
0x2248   :  { %1862 = vpow2.f32 %v1733_v28 }
0x2249   :  { %v1150_v30 = vpop.f32.mrf.mxu1 }
0x224e   :  { %v1863_v31 = vpop.eup %1862 }
0x224f   :  { %v1156_v22 = vadd.f32 1.0, %v1863_v31  ;;  %v1247_v12 = vpop.f32.mrf.mxu2 }
0x2251   :  { %1864 = vrcp.f32 %v1156_v22  ;;  %v1168_v19 = vand.u32 2147483648, %v1156_v22  ;;  %v1166_v1 = vand.u32 2147483647, %v1156_v22  ;;  %vm1162_vm8 = vweird.f32 %v1156_v22 }
0x2253   :  { %v1169_v39 = vor.u32 1.1754944e-38, %v1168_v19  ;;  %vm1167_vm11 = vcmp.eq.f32.partialorder %v1166_v1, 8.507059e+37 }
0x2257   :  { %v1865_v33 = vpop.eup %1864 }
0x2258   :  { %v1158_v13 = vmul.f32 %v1865_v33, %v1156_v22  ;;  %vm1163_vm7 = vweird.f32 %v1865_v33 }
0x2259   :  { %vm1164_vm9 = vmor %vm1162_vm8, %vm1163_vm7 }
0x225a   :  { %v1159_v42 = vsub.f32 1.0, %v1158_v13 }
0x225c   :  { %v1160_v7 = vmul.f32 %v1865_v33, %v1159_v42 }
0x225e   :  { %v1161_v38 = vadd.f32 %v1865_v33, %v1160_v7 }
0x2260   :  { %v1165_v40 = vsel %vm1164_vm9, %v1865_v33, %v1161_v38 }
0x2261   :  { %v1170_v41 = vsel %vm1167_vm11, %v1169_v39, %v1165_v40 }
0x2262   :  { %v1172_v43 = vmul.f32 2.0, %v1170_v41  ;;  %v1174_v51 = vmul.f32 %v1170_v41, %v2357_v11  ;;  %v1736_v11 = vld [vmem:[%s2562_s1 + $0x18] sm:$0xf] }
0x2264   :  { %v1734_v46 = vadd.f32 -1.0, %v1172_v43 }
0x2266   :  { %1176 = vrot.lane.b32.xlu2 %v1734_v46, %s1988_s27 }
0x22c0   :  { %v1177_v48 = vpop.permute.xlu2 %1176 }
0x22c1   :  { %v1179_v49 = vmul.f32 %v1177_v48, %v1170_v41 }
0x22c3   :  { %1181 = vrot.lane.b32.xlu1 %v1179_v49, %s1989_s28 }
0x2335   :  { %v1182_v5 = vpop.permute.xlu1 %1181 }
0x2336   :  { %v2439_v53 = vadd.f32 %v1182_v5, %v1174_v51 }
0x2338   :  { %1866 = vtanh.f32 %v2439_v53 }
0x233e   :  { %v1867_v57 = vpop.eup %1866 }
0x233f   :  { %1187 = vrot.lane.b32.xlu2 %v1867_v57, %s1988_s27 }
0x2399   :  { %v1188_v58 = vpop.permute.xlu2 %1187 }
0x239a   :  { %v2443_v59 = vmul.f32 %v1188_v58, %v1170_v41 }
0x239c   :  { %v1201_v60 = vpack.c.bf16 %v2443_v59, %v2443_v59 }
0x239e   :  { %1203 = vrot.lane.b32.xlu0 %v1201_v60, %s1989_s28 }
0x2410   :  { %v1204_v18 = vpop.permute.xlu0 %1203 }
0x2411   :  { %1737 = vmatmul.msk.bf16.vlgmr.msrb.gmra.mxu0 %vm78_vm5, %v1204_v18  ;;  %1742 = vmatmul.msk.bf16.vlgmr.msra.gmra.mxu1 %vm78_vm5, %v1204_v18 }
0x2412   :  { %1496 = vmatpush.bf16.msrb.mxu0 %v2371_v56 }
0x2416   :  { %1497 = vmatpush.bf16.msrb.mxu0 %v2380_v25 }
0x248e   :  { %v1217_v61 = vpop.f32.mrf.mxu0  ;;  %v2455_v63 = vpop.f32.mrf.mxu1 }
0x248f   :  { %v1221_v2 = vadd.f32 %v1736_v11, %v1217_v61 }
0x2491   :  { %v1222_v3 = vsel %vm296_vm10, %v1221_v2, -inf }
0x2492   :  { %1223 = vmax.xlane.f32.xlu2 %v1222_v3 }
0x2496   :  { %v1219_v52 = vpop.f32.mrf.mxu0  ;;  %v1316_v35 = vpop.f32.mrf.mxu1 }
0x2505   :  { %v1224_v55 = vpop.xlane.xlu2 %1223 }
0x2506   :  { %v1225_v37 = vsub.f32 %v1221_v2, %v1224_v55 }
0x2508   :  { %v1226_v34 = vmul.f32 1.442695, %v1225_v37 }
0x250a   :  { %1868 = vpow2.f32 %v1226_v34 }
0x2510   :  { %v1869_v56 = vpop.eup %1868 }
0x2511   :  { %v1228_v25 = vsel %vm296_vm10, %v1869_v56, 0.0 }
0x2512   :  { %1229 = vadd.xlane.f32.xlu0 %v1228_v25 }
0x2585   :  { %v1230_v62 = vpop.xlane.xlu0 %1229 }
0x2586   :  { %1870 = vrcp.f32 %v1230_v62 }
0x258c   :  { %v1871_v54 = vpop.eup %1870 }
0x258d   :  { %v1232_v45 = vmul.f32 16.0, %v1871_v54 }
0x258f   :  { %v1233_v36 = vmul.f32 %v1869_v56, %v1232_v45 }
0x2591   :  { %v1234_v4 = vmul.f32 %v1735_v0, %v1233_v36 }
0x2593   :  { %v1235_v8 = vpack.c.bf16 %v1234_v4, %v1234_v4 }
0x2595   :  { %1739 = vmatmul.msk.bf16.vlgmr.msrb.gmra.mxu3 %vm101_vm0, %v1235_v8 }
0x2618   :  { %v1261_v9 = vpop.f32.mrf.mxu3 }
0x2619   :  { %v1262_v14 = vadd.f32 %v1261_v9, %v2434_v29 }
0x261b   :  { %v1265_v32 = vadd.f32 %v2407_v10, %v1262_v14 }
0x261d   :  { %v1740_v20 = vmul.f32 -1.442695, %v1265_v32 }
0x261f   :  { %1872 = vpow2.f32 %v1740_v20 }
0x2620   :  { %v1263_v47 = vpop.f32.mrf.mxu3 }
0x2625   :  { %v1873_v21 = vpop.eup %1872 }
0x2626   :  { %v1269_v24 = vadd.f32 1.0, %v1873_v21  ;;  %v1747_v21 = vld [vmem:[%s2562_s1 + $0x1c] sm:$0xf] }
0x2628   :  { %1874 = vrcp.f32 %v1269_v24  ;;  %v1281_v30 = vand.u32 2147483648, %v1269_v24  ;;  %v1279_v22 = vand.u32 2147483647, %v1269_v24  ;;  %vm1275_vm13 = vweird.f32 %v1269_v24 }
0x262a   :  { %v1282_v33 = vor.u32 1.1754944e-38, %v1281_v30  ;;  %vm1280_vm15 = vcmp.eq.f32.partialorder %v1279_v22, 8.507059e+37 }
0x262e   :  { %v1875_v26 = vpop.eup %1874 }
0x262f   :  { %v1271_v16 = vmul.f32 %v1875_v26, %v1269_v24  ;;  %vm1276_vm12 = vweird.f32 %v1875_v26 }
0x2630   :  { %vm1277_vm14 = vmor %vm1275_vm13, %vm1276_vm12  ;;  %vm257_vm12 = vcmask 257024  }
0x2631   :  { %v1272_v28 = vsub.f32 1.0, %v1271_v16 }
0x2633   :  { %v1273_v31 = vmul.f32 %v1875_v26, %v1272_v28 }
0x2635   :  { %v1274_v12 = vadd.f32 %v1875_v26, %v1273_v31 }
0x2637   :  { %v1278_v29 = vsel %vm1277_vm14, %v1875_v26, %v1274_v12 }
0x2638   :  { %v1283_v13 = vsel %vm1280_vm15, %v1282_v33, %v1278_v29 }
0x2639   :  { %v1285_v42 = vmul.f32 2.0, %v1283_v13  ;;  %v1287_v38 = vmul.f32 %v1283_v13, %v2413_v6 }
0x263b   :  { %v1741_v19 = vadd.f32 -1.0, %v1285_v42 }
0x263d   :  { %1289 = vrot.lane.b32.xlu1 %v1741_v19, %s1988_s27 }
0x26af   :  { %v1290_v7 = vpop.permute.xlu1 %1289 }
0x26b0   :  { %v1292_v1 = vmul.f32 %v1290_v7, %v1283_v13  ;;  %v1746_v7 = vld [vmem:[%s2561_s0 + $0x1c] sm:$0xf]  ;;  %s1990_s0 = smov 96  }
0x26b2   :  { %1294 = vrot.lane.b32.xlu1 %v1292_v1, %s1989_s28 }
0x2724   :  { %v1295_v39 = vpop.permute.xlu1 %1294 }
0x2725   :  { %v2468_v40 = vadd.f32 %v1295_v39, %v1287_v38 }
0x2727   :  { %1876 = vtanh.f32 %v2468_v40 }
0x272d   :  { %v1877_v41 = vpop.eup %1876 }
0x272e   :  { %1300 = vrot.lane.b32.xlu1 %v1877_v41, %s1988_s27 }
0x27a0   :  { %v1301_v43 = vpop.permute.xlu1 %1300 }
0x27a1   :  { %v1303_v46 = vmul.f32 %v1301_v43, %v1283_v13 }
0x27a3   :  { %v1304_v48 = vpack.c.bf16 %v1303_v46, %v1303_v46 }
0x27a5   :  { %1319 = vrot.lane.b32.xlu1 %v1304_v48, %s1989_s28 }
0x2817   :  { %v1320_v49 = vpop.permute.xlu1 %1319 }
0x2818   :  { %1743 = vmatmul.msk.bf16.vlgmr.msra.gmra.mxu0 %vm78_vm5, %v1320_v49  ;;  %1749 = vmatmul.msk.bf16.vlgmr.msra.gmra.mxu3 %vm78_vm5, %v1320_v49 }
0x2895   :  { %v1333_v51 = vpop.f32.mrf.mxu0 }
0x2896   :  { %v1334_v6 = vadd.f32 %v1333_v51, %v2455_v63 }
0x2898   :  { %v1337_v5 = vadd.f32 %v2431_v27, %v1334_v6 }
0x289a   :  { %v1744_v57 = vmul.f32 -1.442695, %v1337_v5 }
0x289b   :  { %v2477_v58 = vpop.f32.mrf.mxu3 }
0x289c   :  { %1878 = vpow2.f32 %v1744_v57 }
0x289d   :  { %v1335_v60 = vpop.f32.mrf.mxu0 }
0x28a2   :  { %v1879_v18 = vpop.eup %1878 }
0x28a3   :  { %v1341_v11 = vadd.f32 1.0, %v1879_v18  ;;  %v1432_v61 = vpop.f32.mrf.mxu3 }
0x28a5   :  { %1880 = vrcp.f32 %v1341_v11  ;;  %v1353_v35 = vand.u32 2147483648, %v1341_v11  ;;  %v1351_v37 = vand.u32 2147483647, %v1341_v11  ;;  %vm1347_vm2 = vweird.f32 %v1341_v11 }
0x28a7   :  { %v1354_v63 = vor.u32 1.1754944e-38, %v1353_v35  ;;  %vm1352_vm4 = vcmp.eq.f32.partialorder %v1351_v37, 8.507059e+37 }
0x28ab   :  { %v1881_v2 = vpop.eup %1880 }
0x28ac   :  { %v1343_v3 = vmul.f32 %v1881_v2, %v1341_v11  ;;  %vm1348_vm1 = vweird.f32 %v1881_v2 }
0x28ad   :  { %vm1349_vm3 = vmor %vm1347_vm2, %vm1348_vm1 }
0x28ae   :  { %v1344_v52 = vsub.f32 1.0, %v1343_v3 }
0x28b0   :  { %v1345_v55 = vmul.f32 %v1881_v2, %v1344_v52 }
0x28b2   :  { %v1346_v34 = vadd.f32 %v1881_v2, %v1345_v55 }
0x28b4   :  { %v1350_v56 = vsel %vm1349_vm3, %v1881_v2, %v1346_v34 }
0x28b5   :  { %v1355_v25 = vsel %vm1352_vm4, %v1354_v63, %v1350_v56 }
0x28b6   :  { %v1357_v62 = vmul.f32 2.0, %v1355_v25  ;;  %v1359_v36 = vmul.f32 %v1355_v25, %v2439_v53 }
0x28b8   :  { %v1745_v54 = vadd.f32 -1.0, %v1357_v62 }
0x28ba   :  { %1361 = vrot.lane.b32.xlu2 %v1745_v54, %s1988_s27 }
0x2914   :  { %v1362_v45 = vpop.permute.xlu2 %1361 }
0x2915   :  { %v1364_v0 = vmul.f32 %v1362_v45, %v1355_v25 }
0x2917   :  { %1366 = vrot.lane.b32.xlu1 %v1364_v0, %s1989_s28 }
0x2989   :  { %v1367_v4 = vpop.permute.xlu1 %1366 }
0x298a   :  { %v2482_v8 = vadd.f32 %v1367_v4, %v1359_v36 }
0x298c   :  { %1882 = vtanh.f32 %v2482_v8 }
0x2992   :  { %v1883_v9 = vpop.eup %1882 }
0x2993   :  { %1372 = vrot.lane.b32.xlu1 %v1883_v9, %s1988_s27 }
0x2a05   :  { %v1373_v14 = vpop.permute.xlu1 %1372 }
0x2a06   :  { %v2486_v32 = vmul.f32 %v1373_v14, %v1355_v25 }
0x2a08   :  { %v1386_v20 = vpack.c.bf16 %v2486_v32, %v2486_v32 }
0x2a0a   :  { %1388 = vrot.lane.b32.xlu0 %v1386_v20, %s1989_s28 }
0x2a7c   :  { %v1389_v47 = vpop.permute.xlu0 %1388 }
0x2a7d   :  { %1748 = vmatmul.msk.bf16.vlgmr.msra.gmra.mxu2 %vm78_vm5, %v1389_v47  ;;  %1753 = vmatmul.msk.bf16.vlgmr.msrb.gmra.mxu0 %vm78_vm5, %v1389_v47 }
0x2afa   :  { %v2493_v53 = vpop.f32.mrf.mxu0 }
0x2b00   :  { %v1402_v24 = vpop.f32.mrf.mxu2 }
0x2b01   :  { %v1406_v26 = vadd.f32 %v1747_v21, %v1402_v24 }
0x2b02   :  { %v1501_v16 = vpop.f32.mrf.mxu0 }
0x2b03   :  { %v1407_v28 = vsel %vm296_vm10, %v1406_v26, -inf }
0x2b04   :  { %1408 = vmax.xlane.f32.xlu1 %v1407_v28 }
0x2b08   :  { %v1404_v30 = vpop.f32.mrf.mxu2 }
0x2b77   :  { %v1409_v31 = vpop.xlane.xlu1 %1408 }
0x2b78   :  { %v1410_v22 = vsub.f32 %v1406_v26, %v1409_v31 }
0x2b7a   :  { %v1411_v12 = vmul.f32 1.442695, %v1410_v22 }
0x2b7c   :  { %1884 = vpow2.f32 %v1411_v12 }
0x2b82   :  { %v1885_v33 = vpop.eup %1884 }
0x2b83   :  { %v1413_v29 = vsel %vm296_vm10, %v1885_v33, 0.0 }
0x2b84   :  { %1414 = vadd.xlane.f32.xlu2 %v1413_v29 }
0x2bf7   :  { %v1415_v13 = vpop.xlane.xlu2 %1414 }
0x2bf8   :  { %1886 = vrcp.f32 %v1415_v13 }
0x2bfe   :  { %v1887_v42 = vpop.eup %1886 }
0x2bff   :  { %v1417_v19 = vmul.f32 16.0, %v1887_v42 }
0x2c01   :  { %v1418_v1 = vmul.f32 %v1885_v33, %v1417_v19 }
0x2c03   :  { %v1419_v38 = vmul.f32 %v1746_v7, %v1418_v1 }
0x2c05   :  { %v1420_v39 = vpack.c.bf16 %v1419_v38, %v1419_v38 }
0x2c07   :  { %1750 = vmatmul.msk.bf16.vlgmr.msrb.gmra.mxu1 %vm101_vm0, %v1420_v39 }
0x2c84   :  { %v1446_v41 = vpop.f32.mrf.mxu1 }
0x2c85   :  { %v1447_v43 = vadd.f32 %v1446_v41, %v2477_v58 }
0x2c87   :  { %v1450_v46 = vadd.f32 %v2407_v10, %v1447_v43 }
0x2c89   :  { %v1751_v48 = vmul.f32 -1.442695, %v1450_v46 }
0x2c8b   :  { %1888 = vpow2.f32 %v1751_v48 }
0x2c8c   :  { %v1448_v49 = vpop.f32.mrf.mxu1 }
0x2c91   :  { %v1889_v51 = vpop.eup %1888 }
0x2c92   :  { %v1454_v6 = vadd.f32 1.0, %v1889_v51 }
0x2c94   :  { %1890 = vrcp.f32 %v1454_v6  ;;  %v1466_v18 = vand.u32 2147483648, %v1454_v6  ;;  %v1464_v61 = vand.u32 2147483647, %v1454_v6  ;;  %vm1460_vm0 = vweird.f32 %v1454_v6 }
0x2c96   :  { %v1467_v3 = vor.u32 1.1754944e-38, %v1466_v18  ;;  %vm1465_vm7 = vcmp.eq.f32.partialorder %v1464_v61, 8.507059e+37 }
0x2c9a   :  { %v1891_v5 = vpop.eup %1890 }
0x2c9b   :  { %v1456_v57 = vmul.f32 %v1891_v5, %v1454_v6  ;;  %vm1461_vm10 = vweird.f32 %v1891_v5 }
0x2c9c   :  { %vm1462_vm6 = vmor %vm1460_vm0, %vm1461_vm10 }
0x2c9d   :  { %v1457_v60 = vsub.f32 1.0, %v1456_v57 }
0x2c9f   :  { %v1458_v11 = vmul.f32 %v1891_v5, %v1457_v60 }
0x2ca1   :  { %v1459_v2 = vadd.f32 %v1891_v5, %v1458_v11 }
0x2ca3   :  { %v1463_v58 = vsel %vm1462_vm6, %v1891_v5, %v1459_v2 }
0x2ca4   :  { %v1468_v10 = vsel %vm1465_vm7, %v1467_v3, %v1463_v58 }
0x2ca5   :  { %v1470_v52 = vmul.f32 2.0, %v1468_v10  ;;  %v1472_v34 = vmul.f32 %v1468_v10, %v2468_v40 }
0x2ca7   :  { %v1752_v35 = vadd.f32 -1.0, %v1470_v52 }
0x2ca9   :  { %1474 = vrot.lane.b32.xlu0 %v1752_v35, %s1988_s27 }
0x2d1b   :  { %v1475_v55 = vpop.permute.xlu0 %1474 }
0x2d1c   :  { %v1477_v37 = vmul.f32 %v1475_v55, %v1468_v10 }
0x2d1e   :  { %1479 = vrot.lane.b32.xlu0 %v1477_v37, %s1989_s28 }
0x2d90   :  { %v1480_v63 = vpop.permute.xlu0 %1479 }
0x2d91   :  { %v1482_v56 = vadd.f32 %v1480_v63, %v1472_v34 }
0x2d93   :  { %1892 = vtanh.f32 %v1482_v56 }
0x2d99   :  { %v1893_v25 = vpop.eup %1892 }
0x2d9a   :  { %1485 = vrot.lane.b32.xlu0 %v1893_v25, %s1988_s27 }
0x2e0c   :  { %v1486_v62 = vpop.permute.xlu0 %1485 }
0x2e0d   :  { %v1488_v54 = vmul.f32 %v1486_v62, %v1468_v10 }
0x2e0f   :  { %v1489_v45 = vpack.c.bf16 %v1488_v54, %v1488_v54 }
0x2e11   :  { %1504 = vrot.lane.b32.xlu0 %v1489_v45, %s1989_s28 }
0x2e83   :  { %v1505_v0 = vpop.permute.xlu0 %1504 }
0x2e84   :  { %1754 = vmatmul.msk.bf16.vlgmr.msrb.gmra.mxu2 %vm78_vm5, %v1505_v0 }
0x2f07   :  { %v1518_v36 = vpop.f32.mrf.mxu2 }
0x2f08   :  { %v1519_v4 = vadd.f32 %v1518_v36, %v2493_v53 }
0x2f0a   :  { %v1522_v9 = vadd.f32 %v2431_v27, %v1519_v4 }
0x2f0c   :  { %v1755_v40 = vmul.f32 -1.442695, %v1522_v9 }
0x2f0e   :  { %1894 = vpow2.f32 %v1755_v40 }
0x2f0f   :  { %v1520_v14 = vpop.f32.mrf.mxu2 }
0x2f14   :  { %v1895_v20 = vpop.eup %1894 }
0x2f15   :  { %v1526_v47 = vadd.f32 1.0, %v1895_v20 }
0x2f17   :  { %1896 = vrcp.f32 %v1526_v47  ;;  %v1538_v16 = vand.u32 2147483648, %v1526_v47  ;;  %v1536_v30 = vand.u32 2147483647, %v1526_v47  ;;  %vm1532_vm5 = vweird.f32 %v1526_v47 }
0x2f19   :  { %v1539_v22 = vor.u32 1.1754944e-38, %v1538_v16  ;;  %vm1537_vm11 = vcmp.eq.f32.partialorder %v1536_v30, 8.507059e+37 }
0x2f1d   :  { %v1897_v21 = vpop.eup %1896 }
0x2f1e   :  { %v1528_v24 = vmul.f32 %v1897_v21, %v1526_v47  ;;  %vm1533_vm8 = vweird.f32 %v1897_v21 }
0x2f1f   :  { %vm1534_vm9 = vmor %vm1532_vm5, %vm1533_vm8 }
0x2f20   :  { %v1529_v26 = vsub.f32 1.0, %v1528_v24 }
0x2f22   :  { %v1530_v28 = vmul.f32 %v1897_v21, %v1529_v26 }
0x2f24   :  { %v1531_v31 = vadd.f32 %v1897_v21, %v1530_v28 }
0x2f26   :  { %v1535_v53 = vsel %vm1534_vm9, %v1897_v21, %v1531_v31 }
0x2f27   :  { %v1540_v27 = vsel %vm1537_vm11, %v1539_v22, %v1535_v53 }
0x2f28   :  { %v1542_v12 = vmul.f32 2.0, %v1540_v27 }
0x2f2a   :  { %v1756_v33 = vadd.f32 -1.0, %v1542_v12 }
0x2f2c   :  { %1546 = vrot.lane.b32.xlu1 %v1756_v33, %s1988_s27 }
0x2f34   :  { %254 = vrot.lane.b32.xlu1 %v2156_v15, %s1989_s28 }
0x2f3c   :  { %822 = vrot.lane.b32.xlu1 %v2306_v44, %s1989_s28  ;;  %v1544_v44 = vmul.f32 %v1540_v27, %v2482_v8 }
0x2f44   :  { %1377 = vrot.lane.b32.xlu1 %v2486_v32, %s1989_s28 }
0x2f9e   :  { %v1547_v29 = vpop.permute.xlu1 %1546 }
0x2f9f   :  { %v1549_v13 = vmul.f32 %v1547_v29, %v1540_v27 }
0x2fa1   :  { %1551 = vrot.lane.b32.xlu2 %v1549_v13, %s1989_s28 }
0x2fa6   :  { %v255_v42 = vpop.permute.xlu1 %254 }
0x2fa7   :  { %258 = vst.msk [vmem:[#allocation2] sm:$0xf] %vm257_vm12, %v255_v42 }
0x2fa9   :  { %452 = vrot.lane.b32.xlu2 %v2206_v50, %s1989_s28 }
0x2fae   :  { %v823_v19 = vpop.permute.xlu1 %822 }
0x2faf   :  { %826 = vst.msk [vmem:[#allocation2 + $0xc] sm:$0xf] %vm257_vm12, %v823_v19 }
0x2fb1   :  { %1007 = vrot.lane.b32.xlu2 %v2361_v17, %s1989_s28 }
0x2fb6   :  { %v1378_v15 = vpop.permute.xlu1 %1377 }
0x2fb7   :  { %1381 = vst.msk [vmem:[#allocation2 + $0x18] sm:$0xf] %vm257_vm12, %v1378_v15 }
0x2fb9   :  { %1575 = vrot.lane.b32.xlu2 %v1482_v56, %s1990_s0 }
0x2ffb   :  { %v1552_v32 = vpop.permute.xlu2 %1551 }
0x2ffc   :  { %v1554_v7 = vadd.f32 %v1552_v32, %v1544_v44 }
0x2ffe   :  { %1898 = vtanh.f32 %v1554_v7 }
0x3003   :  { %v453_v1 = vpop.permute.xlu2 %452 }
0x3004   :  { %v1899_v38 = vpop.eup %1898  ;;  %456 = vst.msk [vmem:[#allocation2 + $0x4] sm:$0xf] %vm257_vm12, %v453_v1 }
0x3005   :  { %1557 = vrot.lane.b32.xlu0 %v1899_v38, %s1988_s27 }
0x300b   :  { %v1008_v50 = vpop.permute.xlu2 %1007 }
0x300c   :  { %1011 = vst.msk [vmem:[#allocation2 + $0x10] sm:$0xf] %vm257_vm12, %v1008_v50 }
0x300d   :  { %1568 = vrot.lane.b32.xlu0 %v1488_v54, %s1989_s28 }
0x3013   :  { %v1576_v17 = vpop.permute.xlu2 %1575 }
0x3014   :  { %1578 = vst.msk [vmem:[#allocation6] sm:$0xf] %vm257_vm12, %v1576_v17 }
0x3015   :  { %637 = vrot.lane.b32.xlu0 %v2256_v23, %s1989_s28 }
0x301d   :  { %1192 = vrot.lane.b32.xlu0 %v2443_v59, %s1989_s28 }
0x3077   :  { %v1558_v8 = vpop.permute.xlu0 %1557 }
0x3078   :  { %v1560_v39 = vmul.f32 %v1558_v8, %v1540_v27 }
0x307a   :  { %1562 = vrot.lane.b32.xlu0 %v1560_v39, %s1989_s28 }
0x307f   :  { %v1569_v41 = vpop.permute.xlu0 %1568 }
0x3080   :  { %1571 = vst.msk [vmem:[#allocation4] sm:$0xf] %vm257_vm12, %v1569_v41 }
0x3082   :  { %1580 = vrot.lane.b32.xlu0 %v1554_v7, %s1990_s0 }
0x3087   :  { %v638_v43 = vpop.permute.xlu0 %637 }
0x3088   :  { %641 = vst.msk [vmem:[#allocation2 + $0x8] sm:$0xf] %vm257_vm12, %v638_v43 }
0x308f   :  { %v1193_v46 = vpop.permute.xlu0 %1192 }
0x3090   :  { %1196 = vst.msk [vmem:[#allocation2 + $0x14] sm:$0xf] %vm257_vm12, %v1193_v46 }
0x30ec   :  { %v1563_v23 = vpop.permute.xlu0 %1562 }
0x30ed   :  { %1566 = vst.msk [vmem:[#allocation2 + $0x1c] sm:$0xf] %vm257_vm12, %v1563_v23 }
0x30ee   :  { %1573 = vst.msk [vmem:[#allocation4 + $0x4] sm:$0xf] %vm257_vm12, %v1563_v23  ;;  %1597 = dma.vmem_to_hbm [thread:$0]  %s1590_s15, 512, %s1592_s7, [#allocation3], %s1988_s27, %s1988_s27, %s1993_s21  }
0x30ef   :  { %1610 = dma.vmem_to_hbm [thread:$0]  %s1603_s18, 128, %s1605_s20, [#allocation5], %s1988_s27, %s1988_s27, %s1993_s21  }
0x30f4   :  { %v1581_v59 = vpop.permute.xlu0 %1580 }
0x30f5   :  { %1584 = vst.msk [vmem:[#allocation6 + $0x4] sm:$0xf] %vm257_vm12, %v1581_v59 }
0x30f6   :  { %1623 = dma.vmem_to_hbm [thread:$0]  %s1616_s22, 128, %s1618_s5, [#allocation5], %s1988_s27, %s1988_s27, %s1993_s21  }
0x30f7   :  { %1983 = dma.done.wait [#allocation3], 512  }
0x30f8   :  { %1984 = vsyncadd [#allocation3], 4294966784 }
0x30f9   :  { %1985 = dma.done.wait [#allocation5], 256  }
0x30fa   :  { %1986 = vsyncadd [#allocation5], 4294967040 }
0x30fb   :  { %1636 = vsyncpa [#allocation3], 1 }
0x30fc   :  { %1637 = vsyncpa [#allocation5], 1 }

</bundles_post_ra>
